<compile_context>
chip_gen: v7x
topology: tpu7x:2x2x1
jax: 0.10.0
libtpu: 0.0.40
codegen_flags: <defaults>
</compile_context>

<pallas_src>
import jax
import jax.numpy as jnp
from jax.experimental import pallas as pl
from jax.experimental.pallas import tpu as pltpu

# ----------------------- small synthetic BERT config -----------------------
B = 2              # batch
S = 8              # sequence length
H = 128            # hidden size
NH = 2             # attention heads
DH = H // NH       # head dim = 64
I = 256            # intermediate (FFN) size
L = 2              # number of encoder layers
VOCAB = 64
TYPE_VOCAB = 2
MAX_POS = 16
NUM_LABELS = 8     # tp.label_size
LN_EPS = 1e-12

QKVW = 3 * H               # fused QKV output width (unpadded: [q | k | v])
CLS_PAD = 128              # lane-dense classifier output width


# ------------------------------- fused kernel -------------------------------
def _bert_layers_kernel(emb_ref, emb_g_ref, emb_b_ref, mask_ref,
                        wqkv_ref, bqkv_ref, wo_ref, bo_ref,
                        ln1g_ref, ln1b_ref, w1_ref, b1_ref, w2_ref, b2_ref,
                        ln2g_ref, ln2b_ref, clsw_ref, clsb_ref,
                        logits_ref, x_sc, ctx_sc):
    l = pl.program_id(0)

    def layer_norm(h, g, b):
        mu = jnp.mean(h, axis=-1, keepdims=True)
        var = jnp.mean(jnp.square(h - mu), axis=-1, keepdims=True)
        return (h - mu) * jax.lax.rsqrt(var + LN_EPS) * g + b

    # ---- prologue (first grid step): embedding LayerNorm into residual stream ----
    @pl.when(l == 0)
    def _():
        x_sc[...] = layer_norm(emb_ref[...], emb_g_ref[...], emb_b_ref[...])

    x = x_sc[...]                                                   # (B*S, H) f32

    # ---- fused QKV projection: bf16 operands, f32 accumulation.
    #      1/sqrt(DH) is pre-folded into the q columns of wqkv/bqkv. ----
    qkv = jnp.dot(x.astype(jnp.bfloat16), wqkv_ref[0],
                  preferred_element_type=jnp.float32) + bqkv_ref[0]  # (B*S, 3H) f32

    # ---- self-attention: static loop over (batch, head); per-head ctx written
    #      directly into column slices of the (B*S, H) ctx scratch, then a single
    #      merged output projection (K = NH*DH) below.
    #      Scores / mask-add / softmax stay f32; matmul operands are bf16. ----
    for b in range(B):
        r0 = b * S
        m = mask_ref[b]                                             # (1, S) additive bias
        for h in range(NH):
            c = h * DH
            q = qkv[r0:r0 + S, c:c + DH].astype(jnp.bfloat16)               # pre-scaled
            k = qkv[r0:r0 + S, H + c:H + c + DH].astype(jnp.bfloat16)
            v = qkv[r0:r0 + S, 2 * H + c:2 * H + c + DH].astype(jnp.bfloat16)
            s = jax.lax.dot_general(q, k, (((1,), (1,)), ((), ())),
                                    preferred_element_type=jnp.float32) + m  # (S, S)
            s = s - jnp.max(s, axis=-1, keepdims=True)
            p = jnp.exp(s)
            p = p * pl.reciprocal(jnp.sum(p, axis=-1, keepdims=True), approx=True)
            ctx = jnp.dot(p.astype(jnp.bfloat16), v,
                          preferred_element_type=jnp.float32)               # (S, DH) f32
            ctx_sc[r0:r0 + S, c:c + DH] = ctx
    # TODO(synk): at production B*NH, switch to lax.fori_loop(unroll=True) / flash tiles.

    # ---- merged output projection over all heads (one matmul, K = NH*DH) ----
    attn_out = jnp.dot(ctx_sc[...].astype(jnp.bfloat16), wo_ref[0],
                       preferred_element_type=jnp.float32) + bo_ref[0]       # (B*S, H)

    # ---- residual + LayerNorm 1 (fused epilogue, f32) ----
    x = layer_norm(attn_out + x, ln1g_ref[0], ln1b_ref[0])

    # ---- FFN with gelu, residual + LayerNorm 2 (fused epilogue) ----
    h1 = jnp.dot(x.astype(jnp.bfloat16), w1_ref[0],
                 preferred_element_type=jnp.float32) + b1_ref[0]
    h1 = jax.nn.gelu(h1, approximate=True)     # TODO(synk): erf gelu for exact HF parity
    h2 = jnp.dot(h1.astype(jnp.bfloat16), w2_ref[0],
                 preferred_element_type=jnp.float32) + b2_ref[0]
    x = layer_norm(h2 + x, ln2g_ref[0], ln2b_ref[0])
    x_sc[...] = x

    # ---- classifier at last layer step: lane-dense padded (B*S, 128) output ----
    # (dropout is eval-mode identity)
    @pl.when(l == L - 1)
    def _():
        logits_ref[...] = (jnp.dot(x.astype(jnp.bfloat16), clsw_ref[...],
                                   preferred_element_type=jnp.float32)
                           + clsb_ref[...])


# ----------------------------- parameter init -------------------------------
def init_params(key):
    std = 0.02
    ks = iter(jax.random.split(key, 40))

    def nrm(shape):
        return (std * jax.random.normal(next(ks), shape)).astype(jnp.float32)

    return {
        "word_emb": nrm((VOCAB, H)),
        "pos_emb": nrm((MAX_POS, H)),
        "type_emb": nrm((TYPE_VOCAB, H)),
        "emb_ln_g": jnp.ones((1, H), jnp.float32) + nrm((1, H)),
        "emb_ln_b": nrm((1, H)),
        "wq": nrm((L, H, H)), "bq": nrm((L, 1, H)),
        "wk": nrm((L, H, H)), "bk": nrm((L, 1, H)),
        "wv": nrm((L, H, H)), "bv": nrm((L, 1, H)),
        "wo": nrm((L, H, H)), "bo": nrm((L, 1, H)),
        "ln1_g": jnp.ones((L, 1, H), jnp.float32) + nrm((L, 1, H)),
        "ln1_b": nrm((L, 1, H)),
        "w1": nrm((L, H, I)), "b1": nrm((L, 1, I)),
        "w2": nrm((L, I, H)), "b2": nrm((L, 1, H)),
        "ln2_g": jnp.ones((L, 1, H), jnp.float32) + nrm((L, 1, H)),
        "ln2_b": nrm((L, 1, H)),
        "cls_w": nrm((H, NUM_LABELS)), "cls_b": nrm((1, NUM_LABELS)),
    }


# ---------------------- host-side weight packing (layout) -------------------
def _pack_attention_weights(p):
    """Fuse Q/K/V weights (unpadded), fold in 1/sqrt(DH), cast weights to bf16."""
    scale = 1.0 / (DH ** 0.5)
    # columns [0:H]=q (pre-scaled), [H:2H]=k, [2H:3H]=v; per-head layout inside
    # each block is the natural h*DH:(h+1)*DH column order (matches reference).
    wqkv = jnp.concatenate([p["wq"] * scale, p["wk"], p["wv"]], axis=-1)   # (L, H, 3H)
    bqkv = jnp.concatenate([p["bq"] * scale, p["bk"], p["bv"]], axis=-1)   # (L, 1, 3H)
    # biases stay f32 (added after the f32 accumulation); weights go bf16.
    return wqkv.astype(jnp.bfloat16), bqkv


def _cost_estimate():
    bs = B * S
    flops_layer = (2 * bs * H * QKVW                       # fused QKV proj
                   + B * NH * (4 * S * S * DH)             # scores + ctx
                   + 2 * bs * H * H                        # merged output proj
                   + 2 * bs * H * I + 2 * bs * I * H)      # FFN
    flops = L * flops_layer + 2 * bs * H * CLS_PAD
    transcend = L * (bs * I + B * NH * S * S)
    weight_bytes = (2 * L * (H * QKVW + H * H + H * I + I * H)        # bf16 weights
                    + 4 * L * (QKVW + H + 2 * H + I + H + 2 * H)      # f32 biases / LN
                    + 2 * H * CLS_PAD + 4 * CLS_PAD)
    io_bytes = 4 * (bs * H + B * S + 2 * H + bs * CLS_PAD)
    return pl.CostEstimate(flops=flops, transcendentals=transcend,
                           bytes_accessed=weight_bytes + io_bytes)


# ------------------------------ forward pass --------------------------------
def bert_crf_forward(params, input_ids, token_type_ids, attention_mask):
    # --- embeddings (gather is plain-JAX glue) ---
    positions = jnp.arange(S)
    emb = (jnp.take(params["word_emb"], input_ids, axis=0)
           + jnp.take(params["pos_emb"], positions, axis=0)[None, :, :]
           + jnp.take(params["type_emb"], token_type_ids, axis=0))
    emb = emb.reshape(B * S, H).astype(jnp.float32)

    # additive attention mask, (B, 1, S): broadcast over query rows in-kernel
    add_mask = ((1.0 - attention_mask.astype(jnp.float32)) * -1e9)[:, None, :]

    wqkv_pack, bqkv_pack = _pack_attention_weights(params)

    # bf16 matmul weights (f32 biases / LN params untouched)
    wo_bf = params["wo"].astype(jnp.bfloat16)
    w1_bf = params["w1"].astype(jnp.bfloat16)
    w2_bf = params["w2"].astype(jnp.bfloat16)

    # lane-dense classifier weights (pad NUM_LABELS -> 128), bf16 weight
    cls_w_pad = jnp.pad(params["cls_w"],
                        ((0, 0), (0, CLS_PAD - NUM_LABELS))).astype(jnp.bfloat16)
    cls_b_pad = jnp.pad(params["cls_b"], ((0, 0), (0, CLS_PAD - NUM_LABELS)))

    grid_spec = pltpu.PrefetchScalarGridSpec(
        num_scalar_prefetch=0,
        grid=(L,),
        in_specs=[
            pl.BlockSpec((B * S, H), lambda l: (0, 0)),             # emb
            pl.BlockSpec((1, H), lambda l: (0, 0)),                 # emb_ln_g
            pl.BlockSpec((1, H), lambda l: (0, 0)),                 # emb_ln_b
            pl.BlockSpec((B, 1, S), lambda l: (0, 0, 0)),           # additive mask
            pl.BlockSpec((1, H, QKVW), lambda l: (l, 0, 0)),        # wqkv (packed bf16)
            pl.BlockSpec((1, 1, QKVW), lambda l: (l, 0, 0)),        # bqkv (packed f32)
            pl.BlockSpec((1, H, H), lambda l: (l, 0, 0)),           # wo (bf16)
            pl.BlockSpec((1, 1, H), lambda l: (l, 0, 0)),           # bo
            pl.BlockSpec((1, 1, H), lambda l: (l, 0, 0)),           # ln1_g
            pl.BlockSpec((1, 1, H), lambda l: (l, 0, 0)),           # ln1_b
            pl.BlockSpec((1, H, I), lambda l: (l, 0, 0)),           # w1 (bf16)
            pl.BlockSpec((1, 1, I), lambda l: (l, 0, 0)),           # b1
            pl.BlockSpec((1, I, H), lambda l: (l, 0, 0)),           # w2 (bf16)
            pl.BlockSpec((1, 1, H), lambda l: (l, 0, 0)),           # b2
            pl.BlockSpec((1, 1, H), lambda l: (l, 0, 0)),           # ln2_g
            pl.BlockSpec((1, 1, H), lambda l: (l, 0, 0)),           # ln2_b
            pl.BlockSpec((H, CLS_PAD), lambda l: (0, 0)),           # cls_w (padded bf16)
            pl.BlockSpec((1, CLS_PAD), lambda l: (0, 0)),           # cls_b (padded)
        ],
        out_specs=pl.BlockSpec((B * S, CLS_PAD), lambda l: (0, 0)),
        scratch_shapes=[pltpu.VMEM((B * S, H), jnp.float32),        # residual stream
                        pltpu.VMEM((B * S, H), jnp.float32)],       # merged-head ctx
    )

    logits_pad = pl.pallas_call(
        _bert_layers_kernel,
        out_shape=jax.ShapeDtypeStruct((B * S, CLS_PAD), jnp.float32),
        grid_spec=grid_spec,
        compiler_params=pltpu.CompilerParams(
            # layer axis is a sequential carry; at production shapes add a
            # leading "parallel" row-tile axis for v7x's second TensorCore.
            dimension_semantics=("arbitrary",)),
        cost_estimate=_cost_estimate(),
    )(emb, params["emb_ln_g"], params["emb_ln_b"], add_mask,
      wqkv_pack, bqkv_pack, wo_bf, params["bo"],
      params["ln1_g"], params["ln1_b"], w1_bf, params["b1"],
      w2_bf, params["b2"], params["ln2_g"], params["ln2_b"],
      cls_w_pad, cls_b_pad)

    return logits_pad[:, :NUM_LABELS].reshape(B, S, NUM_LABELS)


# ------------------------- pure-JAX reference (f32) --------------------------
def bert_crf_reference(params, input_ids, token_type_ids, attention_mask):
    hi = jax.lax.Precision.HIGHEST

    def ln(h, g, b):
        mu = jnp.mean(h, axis=-1, keepdims=True)
        var = jnp.mean(jnp.square(h - mu), axis=-1, keepdims=True)
        return (h - mu) * jax.lax.rsqrt(var + LN_EPS) * g + b

    positions = jnp.arange(S)
    emb = (jnp.take(params["word_emb"], input_ids, axis=0)
           + jnp.take(params["pos_emb"], positions, axis=0)[None, :, :]
           + jnp.take(params["type_emb"], token_type_ids, axis=0))
    x = emb.reshape(B * S, H)
    x = ln(x, params["emb_ln_g"], params["emb_ln_b"])
    add_mask = (1.0 - attention_mask.astype(jnp.float32)) * -1e9

    for l in range(L):
        q = jnp.dot(x, params["wq"][l], precision=hi) + params["bq"][l]
        k = jnp.dot(x, params["wk"][l], precision=hi) + params["bk"][l]
        v = jnp.dot(x, params["wv"][l], precision=hi) + params["bv"][l]
        qh = q.reshape(B, S, NH, DH).transpose(0, 2, 1, 3)
        kh = k.reshape(B, S, NH, DH).transpose(0, 2, 1, 3)
        vh = v.reshape(B, S, NH, DH).transpose(0, 2, 1, 3)
        s = jnp.einsum("bhqd,bhkd->bhqk", qh, kh, precision=hi) / (DH ** 0.5)
        s = s + add_mask[:, None, None, :]
        p = jax.nn.softmax(s, axis=-1)
        ctx = jnp.einsum("bhqk,bhkd->bhqd", p, vh, precision=hi)
        ctx = ctx.transpose(0, 2, 1, 3).reshape(B * S, H)
        attn_out = jnp.dot(ctx, params["wo"][l], precision=hi) + params["bo"][l]
        x = ln(attn_out + x, params["ln1_g"][l], params["ln1_b"][l])
        ffn = jax.nn.gelu(jnp.dot(x, params["w1"][l], precision=hi) + params["b1"][l],
                          approximate=True)
        ffn = jnp.dot(ffn, params["w2"][l], precision=hi) + params["b2"][l]
        x = ln(ffn + x, params["ln2_g"][l], params["ln2_b"][l])

    logits = jnp.dot(x, params["cls_w"], precision=hi) + params["cls_b"]
    return logits.reshape(B, S, NUM_LABELS)


# --------------------------------- main --------------------------------------
if __name__ == "__main__":
    key = jax.random.PRNGKey(0)
    k_param, k_ids = jax.random.split(key)

    params = init_params(k_param)

    input_ids = jax.random.randint(k_ids, (B, S), 0, VOCAB, dtype=jnp.int32)
    token_type_ids = jnp.zeros((B, S), jnp.int32)
    attention_mask = jnp.array(
        [[1, 1, 1, 1, 1, 1, 1, 1],
         [1, 1, 1, 1, 1, 1, 0, 0]], dtype=jnp.int32)

    fwd = jax.jit(bert_crf_forward)
    logits = jax.block_until_ready(fwd(params, input_ids, token_type_ids, attention_mask))
    assert logits.shape == (B, S, NUM_LABELS)
    assert bool(jnp.all(jnp.isfinite(logits)))

    # Reference is pure f32; the kernel uses bf16 matmul operands (f32 accumulation),
    # so the expected gap is ~1e-2 from operand rounding, not a structural error.
    ref = bert_crf_reference(params, input_ids, token_type_ids, attention_mask)
    max_err = float(jnp.max(jnp.abs(logits - ref)))
    assert max_err < 5e-2, f"mismatch vs pure-JAX reference: max abs err {max_err}"

    print("KERNEL_OK")
</pallas_src>

<mosaic_0001>
module attributes {stable_mosaic.version = 11 : i64} {
  func.func @_bert_layers_kernel(%arg0: i32, %arg1: memref<16x128xf32, #tpu.memory_space<vmem>>, %arg2: memref<1x128xf32, #tpu.memory_space<vmem>>, %arg3: memref<1x128xf32, #tpu.memory_space<vmem>>, %arg4: memref<2x1x8xf32, #tpu.memory_space<vmem>>, %arg5: memref<1x128x384xbf16, #tpu.memory_space<vmem>>, %arg6: memref<1x1x384xf32, #tpu.memory_space<vmem>>, %arg7: memref<1x128x128xbf16, #tpu.memory_space<vmem>>, %arg8: memref<1x1x128xf32, #tpu.memory_space<vmem>>, %arg9: memref<1x1x128xf32, #tpu.memory_space<vmem>>, %arg10: memref<1x1x128xf32, #tpu.memory_space<vmem>>, %arg11: memref<1x128x256xbf16, #tpu.memory_space<vmem>>, %arg12: memref<1x1x256xf32, #tpu.memory_space<vmem>>, %arg13: memref<1x256x128xbf16, #tpu.memory_space<vmem>>, %arg14: memref<1x1x128xf32, #tpu.memory_space<vmem>>, %arg15: memref<1x1x128xf32, #tpu.memory_space<vmem>>, %arg16: memref<1x1x128xf32, #tpu.memory_space<vmem>>, %arg17: memref<128x128xbf16, #tpu.memory_space<vmem>>, %arg18: memref<1x128xf32, #tpu.memory_space<vmem>>, %arg19: memref<16x128xf32, #tpu.memory_space<vmem>>, %arg20: memref<16x128xf32, #tpu.memory_space<vmem>>, %arg21: memref<16x128xf32, #tpu.memory_space<vmem>>) attributes {dimension_semantics = [#tpu.dimension_semantics<arbitrary>], iteration_bounds = array<i64: 2>, scalar_prefetch = 0 : i64, scratch_operands = 2 : i64, tpu.core_type = #tpu.core_type<tc>, window_params = [{pipeline_mode = #tpu.pipeline_mode<synchronous>, transform_indices = @transform_0, window_bounds = array<i64: 16, 128>}, {pipeline_mode = #tpu.pipeline_mode<synchronous>, transform_indices = @transform_1, window_bounds = array<i64: 1, 128>}, {pipeline_mode = #tpu.pipeline_mode<synchronous>, transform_indices = @transform_2, window_bounds = array<i64: 1, 128>}, {pipeline_mode = #tpu.pipeline_mode<synchronous>, transform_indices = @transform_3, window_bounds = array<i64: 2, 1, 8>}, {transform_indices = @transform_4, window_bounds = array<i64: 1, 128, 384>}, {transform_indices = @transform_5, window_bounds = array<i64: 1, 1, 384>}, {transform_indices = @transform_6, window_bounds = array<i64: 1, 128, 128>}, {transform_indices = @transform_7, window_bounds = array<i64: 1, 1, 128>}, {transform_indices = @transform_8, window_bounds = array<i64: 1, 1, 128>}, {transform_indices = @transform_9, window_bounds = array<i64: 1, 1, 128>}, {transform_indices = @transform_10, window_bounds = array<i64: 1, 128, 256>}, {transform_indices = @transform_11, window_bounds = array<i64: 1, 1, 256>}, {transform_indices = @transform_12, window_bounds = array<i64: 1, 256, 128>}, {transform_indices = @transform_13, window_bounds = array<i64: 1, 1, 128>}, {transform_indices = @transform_14, window_bounds = array<i64: 1, 1, 128>}, {transform_indices = @transform_15, window_bounds = array<i64: 1, 1, 128>}, {pipeline_mode = #tpu.pipeline_mode<synchronous>, transform_indices = @transform_16, window_bounds = array<i64: 128, 128>}, {pipeline_mode = #tpu.pipeline_mode<synchronous>, transform_indices = @transform_17, window_bounds = array<i64: 1, 128>}, {pipeline_mode = #tpu.pipeline_mode<synchronous>, transform_indices = @transform_18, window_bounds = array<i64: 16, 128>}]} {
    %c0_i32 = arith.constant 0 : i32
    %0 = arith.cmpi eq, %arg0, %c0_i32 : i32
    %1 = arith.extui %0 : i1 to i32
    %c0_i32_0 = arith.constant 0 : i32
    %2 = arith.cmpi ne, %1, %c0_i32_0 : i32
    scf.if %2 {
      %c0_87 = arith.constant 0 : index
      %c0_88 = arith.constant 0 : index
      %200 = vector.load %arg1[%c0_87, %c0_88] : memref<16x128xf32, #tpu.memory_space<vmem>>, vector<16x128xf32>
      %c0_89 = arith.constant 0 : index
      %c0_90 = arith.constant 0 : index
      %201 = vector.load %arg2[%c0_89, %c0_90] : memref<1x128xf32, #tpu.memory_space<vmem>>, vector<1x128xf32>
      %c0_91 = arith.constant 0 : index
      %c0_92 = arith.constant 0 : index
      %202 = vector.load %arg3[%c0_91, %c0_92] : memref<1x128xf32, #tpu.memory_space<vmem>>, vector<1x128xf32>
      %cst_93 = arith.constant dense<0.000000e+00> : vector<16xf32>
      %203 = vector.multi_reduction <add>, %200, %cst_93 [1] : vector<16x128xf32> to vector<16xf32>
      %204 = vector.shape_cast %203 : vector<16xf32> to vector<16x1xf32>
      %cst_94 = arith.constant 1.280000e+02 : f32
      %205 = vector.broadcast %cst_94 : f32 to vector<16x1xf32>
      %206 = arith.divf %204, %205 : vector<16x1xf32>
      %207 = vector.broadcast %206 : vector<16x1xf32> to vector<16x128xf32>
      %208 = arith.subf %200, %207 : vector<16x128xf32>
      %209 = arith.mulf %208, %208 : vector<16x128xf32>
      %cst_95 = arith.constant dense<0.000000e+00> : vector<16xf32>
      %210 = vector.multi_reduction <add>, %209, %cst_95 [1] : vector<16x128xf32> to vector<16xf32>
      %211 = vector.shape_cast %210 : vector<16xf32> to vector<16x1xf32>
      %cst_96 = arith.constant 1.280000e+02 : f32
      %212 = vector.broadcast %cst_96 : f32 to vector<16x1xf32>
      %213 = arith.divf %211, %212 : vector<16x1xf32>
      %214 = vector.broadcast %206 : vector<16x1xf32> to vector<16x128xf32>
      %215 = arith.subf %200, %214 : vector<16x128xf32>
      %cst_97 = arith.constant 9.99999996E-13 : f32
      %216 = vector.broadcast %cst_97 : f32 to vector<16x1xf32>
      %217 = arith.addf %213, %216 : vector<16x1xf32>
      %218 = math.rsqrt %217 : vector<16x1xf32>
      %219 = vector.broadcast %218 : vector<16x1xf32> to vector<16x128xf32>
      %220 = arith.mulf %215, %219 : vector<16x128xf32>
      %221 = vector.broadcast %201 : vector<1x128xf32> to vector<16x128xf32>
      %222 = arith.mulf %220, %221 : vector<16x128xf32>
      %223 = vector.broadcast %202 : vector<1x128xf32> to vector<16x128xf32>
      %224 = arith.addf %222, %223 : vector<16x128xf32>
      %c0_98 = arith.constant 0 : index
      %c0_99 = arith.constant 0 : index
      %225 = vector.load %arg20[%c0_98, %c0_99] : memref<16x128xf32, #tpu.memory_space<vmem>>, vector<16x128xf32>
      tpu.vector_store %arg20[%c0_98, %c0_99], %224 {strides = array<i32>} : memref<16x128xf32, #tpu.memory_space<vmem>>, vector<16x128xf32>,
    } else {
    }
    %c0 = arith.constant 0 : index
    %c0_1 = arith.constant 0 : index
    %3 = vector.load %arg20[%c0, %c0_1] : memref<16x128xf32, #tpu.memory_space<vmem>>, vector<16x128xf32>
    %4 = arith.truncf %3 : vector<16x128xf32> to vector<16x128xbf16>
    %c0_2 = arith.constant 0 : index
    %c0_3 = arith.constant 0 : index
    %c0_4 = arith.constant 0 : index
    %5 = vector.load %arg5[%c0_2, %c0_3, %c0_4] : memref<1x128x384xbf16, #tpu.memory_space<vmem>>, vector<1x128x384xbf16>
    %6 = vector.shape_cast %5 : vector<1x128x384xbf16> to vector<128x384xbf16>
    %cst = arith.constant dense<0.000000e+00> : vector<16x384xf32>
    %7 = tpu.matmul %4, %6, %cst {dimension_numbers = #tpu.dot_dimension_numbers<[1], [0], [0], [1], [0, 0, 1, 1], [], []>} : vector<16x128xbf16>, vector<128x384xbf16>, vector<16x384xf32> -> vector<16x384xf32>
    %c0_5 = arith.constant 0 : index
    %c0_6 = arith.constant 0 : index
    %c0_7 = arith.constant 0 : index
    %8 = vector.load %arg6[%c0_5, %c0_6, %c0_7] : memref<1x1x384xf32, #tpu.memory_space<vmem>>, vector<1x1x384xf32>
    %9 = vector.shape_cast %8 : vector<1x1x384xf32> to vector<1x384xf32>
    %10 = vector.broadcast %9 : vector<1x384xf32> to vector<16x384xf32>
    %11 = arith.addf %7, %10 : vector<16x384xf32>
    %c0_8 = arith.constant 0 : index
    %c0_9 = arith.constant 0 : index
    %c0_10 = arith.constant 0 : index
    %12 = vector.load %arg4[%c0_8, %c0_9, %c0_10] : memref<2x1x8xf32, #tpu.memory_space<vmem>>, vector<1x1x8xf32>
    %13 = vector.shape_cast %12 : vector<1x1x8xf32> to vector<1x8xf32>
    %14 = vector.extract_strided_slice %11 {offsets = [0, 0], sizes = [8, 64], strides = [1, 1]} : vector<16x384xf32> to vector<8x64xf32>
    %15 = arith.truncf %14 : vector<8x64xf32> to vector<8x64xbf16>
    %16 = vector.extract_strided_slice %11 {offsets = [0, 128], sizes = [8, 64], strides = [1, 1]} : vector<16x384xf32> to vector<8x64xf32>
    %17 = arith.truncf %16 : vector<8x64xf32> to vector<8x64xbf16>
    %18 = vector.extract_strided_slice %11 {offsets = [0, 256], sizes = [8, 64], strides = [1, 1]} : vector<16x384xf32> to vector<8x64xf32>
    %19 = arith.truncf %18 : vector<8x64xf32> to vector<8x64xbf16>
    %cst_11 = arith.constant dense<0.000000e+00> : vector<8x8xf32>
    %20 = tpu.matmul %15, %17, %cst_11 {dimension_numbers = #tpu.dot_dimension_numbers<[1], [1], [0], [0], [0, 0, 1, 0], [], []>} : vector<8x64xbf16>, vector<8x64xbf16>, vector<8x8xf32> -> vector<8x8xf32>
    %21 = vector.broadcast %13 : vector<1x8xf32> to vector<8x8xf32>
    %22 = arith.addf %20, %21 : vector<8x8xf32>
    %cst_12 = arith.constant dense<0xFF800000> : vector<8xf32>
    %23 = vector.multi_reduction <maximumf>, %22, %cst_12 [1] : vector<8x8xf32> to vector<8xf32>
    %24 = vector.shape_cast %23 : vector<8xf32> to vector<8x1xf32>
    %25 = vector.broadcast %24 : vector<8x1xf32> to vector<8x8xf32>
    %26 = arith.subf %22, %25 : vector<8x8xf32>
    %27 = math.exp %26 : vector<8x8xf32>
    %cst_13 = arith.constant dense<0.000000e+00> : vector<8xf32>
    %28 = vector.multi_reduction <add>, %27, %cst_13 [1] : vector<8x8xf32> to vector<8xf32>
    %29 = vector.shape_cast %28 : vector<8xf32> to vector<8x1xf32>
    %30 = tpu.reciprocal %29 {approx = true} : vector<8x1xf32> -> vector<8x1xf32>
    %31 = vector.broadcast %30 : vector<8x1xf32> to vector<8x8xf32>
    %32 = arith.mulf %27, %31 : vector<8x8xf32>
    %33 = arith.truncf %32 : vector<8x8xf32> to vector<8x8xbf16>
    %cst_14 = arith.constant dense<0.000000e+00> : vector<8x64xf32>
    %34 = tpu.matmul %33, %19, %cst_14 {dimension_numbers = #tpu.dot_dimension_numbers<[1], [0], [0], [1], [0, 0, 1, 1], [], []>} : vector<8x8xbf16>, vector<8x64xbf16>, vector<8x64xf32> -> vector<8x64xf32>
    %c0_15 = arith.constant 0 : index
    %c0_16 = arith.constant 0 : index
    %35 = vector.load %arg21[%c0_15, %c0_16] : memref<16x128xf32, #tpu.memory_space<vmem>>, vector<8x64xf32>
    tpu.vector_store %arg21[%c0_15, %c0_16], %34 {strides = array<i32>} : memref<16x128xf32, #tpu.memory_space<vmem>>, vector<8x64xf32>,
    %36 = vector.extract_strided_slice %11 {offsets = [0, 64], sizes = [8, 64], strides = [1, 1]} : vector<16x384xf32> to vector<8x64xf32>
    %37 = arith.truncf %36 : vector<8x64xf32> to vector<8x64xbf16>
    %38 = vector.extract_strided_slice %11 {offsets = [0, 192], sizes = [8, 64], strides = [1, 1]} : vector<16x384xf32> to vector<8x64xf32>
    %39 = arith.truncf %38 : vector<8x64xf32> to vector<8x64xbf16>
    %40 = vector.extract_strided_slice %11 {offsets = [0, 320], sizes = [8, 64], strides = [1, 1]} : vector<16x384xf32> to vector<8x64xf32>
    %41 = arith.truncf %40 : vector<8x64xf32> to vector<8x64xbf16>
    %cst_17 = arith.constant dense<0.000000e+00> : vector<8x8xf32>
    %42 = tpu.matmul %37, %39, %cst_17 {dimension_numbers = #tpu.dot_dimension_numbers<[1], [1], [0], [0], [0, 0, 1, 0], [], []>} : vector<8x64xbf16>, vector<8x64xbf16>, vector<8x8xf32> -> vector<8x8xf32>
    %43 = vector.broadcast %13 : vector<1x8xf32> to vector<8x8xf32>
    %44 = arith.addf %42, %43 : vector<8x8xf32>
    %cst_18 = arith.constant dense<0xFF800000> : vector<8xf32>
    %45 = vector.multi_reduction <maximumf>, %44, %cst_18 [1] : vector<8x8xf32> to vector<8xf32>
    %46 = vector.shape_cast %45 : vector<8xf32> to vector<8x1xf32>
    %47 = vector.broadcast %46 : vector<8x1xf32> to vector<8x8xf32>
    %48 = arith.subf %44, %47 : vector<8x8xf32>
    %49 = math.exp %48 : vector<8x8xf32>
    %cst_19 = arith.constant dense<0.000000e+00> : vector<8xf32>
    %50 = vector.multi_reduction <add>, %49, %cst_19 [1] : vector<8x8xf32> to vector<8xf32>
    %51 = vector.shape_cast %50 : vector<8xf32> to vector<8x1xf32>
    %52 = tpu.reciprocal %51 {approx = true} : vector<8x1xf32> -> vector<8x1xf32>
    %53 = vector.broadcast %52 : vector<8x1xf32> to vector<8x8xf32>
    %54 = arith.mulf %49, %53 : vector<8x8xf32>
    %55 = arith.truncf %54 : vector<8x8xf32> to vector<8x8xbf16>
    %cst_20 = arith.constant dense<0.000000e+00> : vector<8x64xf32>
    %56 = tpu.matmul %55, %41, %cst_20 {dimension_numbers = #tpu.dot_dimension_numbers<[1], [0], [0], [1], [0, 0, 1, 1], [], []>} : vector<8x8xbf16>, vector<8x64xbf16>, vector<8x64xf32> -> vector<8x64xf32>
    %c0_21 = arith.constant 0 : index
    %c64 = arith.constant 64 : index
    %57 = vector.load %arg21[%c0_21, %c64] : memref<16x128xf32, #tpu.memory_space<vmem>>, vector<8x64xf32>
    tpu.vector_store %arg21[%c0_21, %c64], %56 {strides = array<i32>} : memref<16x128xf32, #tpu.memory_space<vmem>>, vector<8x64xf32>,
    %c1 = arith.constant 1 : index
    %c0_22 = arith.constant 0 : index
    %c0_23 = arith.constant 0 : index
    %58 = vector.load %arg4[%c1, %c0_22, %c0_23] : memref<2x1x8xf32, #tpu.memory_space<vmem>>, vector<1x1x8xf32>
    %59 = vector.shape_cast %58 : vector<1x1x8xf32> to vector<1x8xf32>
    %60 = vector.extract_strided_slice %11 {offsets = [8, 0], sizes = [8, 64], strides = [1, 1]} : vector<16x384xf32> to vector<8x64xf32>
    %61 = arith.truncf %60 : vector<8x64xf32> to vector<8x64xbf16>
    %62 = vector.extract_strided_slice %11 {offsets = [8, 128], sizes = [8, 64], strides = [1, 1]} : vector<16x384xf32> to vector<8x64xf32>
    %63 = arith.truncf %62 : vector<8x64xf32> to vector<8x64xbf16>
    %64 = vector.extract_strided_slice %11 {offsets = [8, 256], sizes = [8, 64], strides = [1, 1]} : vector<16x384xf32> to vector<8x64xf32>
    %65 = arith.truncf %64 : vector<8x64xf32> to vector<8x64xbf16>
    %cst_24 = arith.constant dense<0.000000e+00> : vector<8x8xf32>
    %66 = tpu.matmul %61, %63, %cst_24 {dimension_numbers = #tpu.dot_dimension_numbers<[1], [1], [0], [0], [0, 0, 1, 0], [], []>} : vector<8x64xbf16>, vector<8x64xbf16>, vector<8x8xf32> -> vector<8x8xf32>
    %67 = vector.broadcast %59 : vector<1x8xf32> to vector<8x8xf32>
    %68 = arith.addf %66, %67 : vector<8x8xf32>
    %cst_25 = arith.constant dense<0xFF800000> : vector<8xf32>
    %69 = vector.multi_reduction <maximumf>, %68, %cst_25 [1] : vector<8x8xf32> to vector<8xf32>
    %70 = vector.shape_cast %69 : vector<8xf32> to vector<8x1xf32>
    %71 = vector.broadcast %70 : vector<8x1xf32> to vector<8x8xf32>
    %72 = arith.subf %68, %71 : vector<8x8xf32>
    %73 = math.exp %72 : vector<8x8xf32>
    %cst_26 = arith.constant dense<0.000000e+00> : vector<8xf32>
    %74 = vector.multi_reduction <add>, %73, %cst_26 [1] : vector<8x8xf32> to vector<8xf32>
    %75 = vector.shape_cast %74 : vector<8xf32> to vector<8x1xf32>
    %76 = tpu.reciprocal %75 {approx = true} : vector<8x1xf32> -> vector<8x1xf32>
    %77 = vector.broadcast %76 : vector<8x1xf32> to vector<8x8xf32>
    %78 = arith.mulf %73, %77 : vector<8x8xf32>
    %79 = arith.truncf %78 : vector<8x8xf32> to vector<8x8xbf16>
    %cst_27 = arith.constant dense<0.000000e+00> : vector<8x64xf32>
    %80 = tpu.matmul %79, %65, %cst_27 {dimension_numbers = #tpu.dot_dimension_numbers<[1], [0], [0], [1], [0, 0, 1, 1], [], []>} : vector<8x8xbf16>, vector<8x64xbf16>, vector<8x64xf32> -> vector<8x64xf32>
    %c8 = arith.constant 8 : index
    %c0_28 = arith.constant 0 : index
    %81 = vector.load %arg21[%c8, %c0_28] : memref<16x128xf32, #tpu.memory_space<vmem>>, vector<8x64xf32>
    tpu.vector_store %arg21[%c8, %c0_28], %80 {strides = array<i32>} : memref<16x128xf32, #tpu.memory_space<vmem>>, vector<8x64xf32>,
    %82 = vector.extract_strided_slice %11 {offsets = [8, 64], sizes = [8, 64], strides = [1, 1]} : vector<16x384xf32> to vector<8x64xf32>
    %83 = arith.truncf %82 : vector<8x64xf32> to vector<8x64xbf16>
    %84 = vector.extract_strided_slice %11 {offsets = [8, 192], sizes = [8, 64], strides = [1, 1]} : vector<16x384xf32> to vector<8x64xf32>
    %85 = arith.truncf %84 : vector<8x64xf32> to vector<8x64xbf16>
    %86 = vector.extract_strided_slice %11 {offsets = [8, 320], sizes = [8, 64], strides = [1, 1]} : vector<16x384xf32> to vector<8x64xf32>
    %87 = arith.truncf %86 : vector<8x64xf32> to vector<8x64xbf16>
    %cst_29 = arith.constant dense<0.000000e+00> : vector<8x8xf32>
    %88 = tpu.matmul %83, %85, %cst_29 {dimension_numbers = #tpu.dot_dimension_numbers<[1], [1], [0], [0], [0, 0, 1, 0], [], []>} : vector<8x64xbf16>, vector<8x64xbf16>, vector<8x8xf32> -> vector<8x8xf32>
    %89 = vector.broadcast %59 : vector<1x8xf32> to vector<8x8xf32>
    %90 = arith.addf %88, %89 : vector<8x8xf32>
    %cst_30 = arith.constant dense<0xFF800000> : vector<8xf32>
    %91 = vector.multi_reduction <maximumf>, %90, %cst_30 [1] : vector<8x8xf32> to vector<8xf32>
    %92 = vector.shape_cast %91 : vector<8xf32> to vector<8x1xf32>
    %93 = vector.broadcast %92 : vector<8x1xf32> to vector<8x8xf32>
    %94 = arith.subf %90, %93 : vector<8x8xf32>
    %95 = math.exp %94 : vector<8x8xf32>
    %cst_31 = arith.constant dense<0.000000e+00> : vector<8xf32>
    %96 = vector.multi_reduction <add>, %95, %cst_31 [1] : vector<8x8xf32> to vector<8xf32>
    %97 = vector.shape_cast %96 : vector<8xf32> to vector<8x1xf32>
    %98 = tpu.reciprocal %97 {approx = true} : vector<8x1xf32> -> vector<8x1xf32>
    %99 = vector.broadcast %98 : vector<8x1xf32> to vector<8x8xf32>
    %100 = arith.mulf %95, %99 : vector<8x8xf32>
    %101 = arith.truncf %100 : vector<8x8xf32> to vector<8x8xbf16>
    %cst_32 = arith.constant dense<0.000000e+00> : vector<8x64xf32>
    %102 = tpu.matmul %101, %87, %cst_32 {dimension_numbers = #tpu.dot_dimension_numbers<[1], [0], [0], [1], [0, 0, 1, 1], [], []>} : vector<8x8xbf16>, vector<8x64xbf16>, vector<8x64xf32> -> vector<8x64xf32>
    %c8_33 = arith.constant 8 : index
    %c64_34 = arith.constant 64 : index
    %103 = vector.load %arg21[%c8_33, %c64_34] : memref<16x128xf32, #tpu.memory_space<vmem>>, vector<8x64xf32>
    tpu.vector_store %arg21[%c8_33, %c64_34], %102 {strides = array<i32>} : memref<16x128xf32, #tpu.memory_space<vmem>>, vector<8x64xf32>,
    %c0_35 = arith.constant 0 : index
    %c0_36 = arith.constant 0 : index
    %104 = vector.load %arg21[%c0_35, %c0_36] : memref<16x128xf32, #tpu.memory_space<vmem>>, vector<16x128xf32>
    %105 = arith.truncf %104 : vector<16x128xf32> to vector<16x128xbf16>
    %c0_37 = arith.constant 0 : index
    %c0_38 = arith.constant 0 : index
    %c0_39 = arith.constant 0 : index
    %106 = vector.load %arg7[%c0_37, %c0_38, %c0_39] : memref<1x128x128xbf16, #tpu.memory_space<vmem>>, vector<1x128x128xbf16>
    %107 = vector.shape_cast %106 : vector<1x128x128xbf16> to vector<128x128xbf16>
    %cst_40 = arith.constant dense<0.000000e+00> : vector<16x128xf32>
    %108 = tpu.matmul %105, %107, %cst_40 {dimension_numbers = #tpu.dot_dimension_numbers<[1], [0], [0], [1], [0, 0, 1, 1], [], []>} : vector<16x128xbf16>, vector<128x128xbf16>, vector<16x128xf32> -> vector<16x128xf32>
    %c0_41 = arith.constant 0 : index
    %c0_42 = arith.constant 0 : index
    %c0_43 = arith.constant 0 : index
    %109 = vector.load %arg8[%c0_41, %c0_42, %c0_43] : memref<1x1x128xf32, #tpu.memory_space<vmem>>, vector<1x1x128xf32>
    %110 = vector.shape_cast %109 : vector<1x1x128xf32> to vector<1x128xf32>
    %111 = vector.broadcast %110 : vector<1x128xf32> to vector<16x128xf32>
    %112 = arith.addf %108, %111 : vector<16x128xf32>
    %113 = arith.addf %112, %3 : vector<16x128xf32>
    %c0_44 = arith.constant 0 : index
    %c0_45 = arith.constant 0 : index
    %c0_46 = arith.constant 0 : index
    %114 = vector.load %arg9[%c0_44, %c0_45, %c0_46] : memref<1x1x128xf32, #tpu.memory_space<vmem>>, vector<1x1x128xf32>
    %115 = vector.shape_cast %114 : vector<1x1x128xf32> to vector<1x128xf32>
    %c0_47 = arith.constant 0 : index
    %c0_48 = arith.constant 0 : index
    %c0_49 = arith.constant 0 : index
    %116 = vector.load %arg10[%c0_47, %c0_48, %c0_49] : memref<1x1x128xf32, #tpu.memory_space<vmem>>, vector<1x1x128xf32>
    %117 = vector.shape_cast %116 : vector<1x1x128xf32> to vector<1x128xf32>
    %cst_50 = arith.constant dense<0.000000e+00> : vector<16xf32>
    %118 = vector.multi_reduction <add>, %113, %cst_50 [1] : vector<16x128xf32> to vector<16xf32>
    %119 = vector.shape_cast %118 : vector<16xf32> to vector<16x1xf32>
    %cst_51 = arith.constant 1.280000e+02 : f32
    %120 = vector.broadcast %cst_51 : f32 to vector<16x1xf32>
    %121 = arith.divf %119, %120 : vector<16x1xf32>
    %122 = vector.broadcast %121 : vector<16x1xf32> to vector<16x128xf32>
    %123 = arith.subf %113, %122 : vector<16x128xf32>
    %124 = arith.mulf %123, %123 : vector<16x128xf32>
    %cst_52 = arith.constant dense<0.000000e+00> : vector<16xf32>
    %125 = vector.multi_reduction <add>, %124, %cst_52 [1] : vector<16x128xf32> to vector<16xf32>
    %126 = vector.shape_cast %125 : vector<16xf32> to vector<16x1xf32>
    %cst_53 = arith.constant 1.280000e+02 : f32
    %127 = vector.broadcast %cst_53 : f32 to vector<16x1xf32>
    %128 = arith.divf %126, %127 : vector<16x1xf32>
    %129 = vector.broadcast %121 : vector<16x1xf32> to vector<16x128xf32>
    %130 = arith.subf %113, %129 : vector<16x128xf32>
    %cst_54 = arith.constant 9.99999996E-13 : f32
    %131 = vector.broadcast %cst_54 : f32 to vector<16x1xf32>
    %132 = arith.addf %128, %131 : vector<16x1xf32>
    %133 = math.rsqrt %132 : vector<16x1xf32>
    %134 = vector.broadcast %133 : vector<16x1xf32> to vector<16x128xf32>
    %135 = arith.mulf %130, %134 : vector<16x128xf32>
    %136 = vector.broadcast %115 : vector<1x128xf32> to vector<16x128xf32>
    %137 = arith.mulf %135, %136 : vector<16x128xf32>
    %138 = vector.broadcast %117 : vector<1x128xf32> to vector<16x128xf32>
    %139 = arith.addf %137, %138 : vector<16x128xf32>
    %140 = arith.truncf %139 : vector<16x128xf32> to vector<16x128xbf16>
    %c0_55 = arith.constant 0 : index
    %c0_56 = arith.constant 0 : index
    %c0_57 = arith.constant 0 : index
    %141 = vector.load %arg11[%c0_55, %c0_56, %c0_57] : memref<1x128x256xbf16, #tpu.memory_space<vmem>>, vector<1x128x256xbf16>
    %142 = vector.shape_cast %141 : vector<1x128x256xbf16> to vector<128x256xbf16>
    %cst_58 = arith.constant dense<0.000000e+00> : vector<16x256xf32>
    %143 = tpu.matmul %140, %142, %cst_58 {dimension_numbers = #tpu.dot_dimension_numbers<[1], [0], [0], [1], [0, 0, 1, 1], [], []>} : vector<16x128xbf16>, vector<128x256xbf16>, vector<16x256xf32> -> vector<16x256xf32>
    %c0_59 = arith.constant 0 : index
    %c0_60 = arith.constant 0 : index
    %c0_61 = arith.constant 0 : index
    %144 = vector.load %arg12[%c0_59, %c0_60, %c0_61] : memref<1x1x256xf32, #tpu.memory_space<vmem>>, vector<1x1x256xf32>
    %145 = vector.shape_cast %144 : vector<1x1x256xf32> to vector<1x256xf32>
    %146 = vector.broadcast %145 : vector<1x256xf32> to vector<16x256xf32>
    %147 = arith.addf %143, %146 : vector<16x256xf32>
    %148 = arith.mulf %147, %147 : vector<16x256xf32>
    %149 = arith.mulf %147, %148 : vector<16x256xf32>
    %cst_62 = arith.constant 4.471500e-02 : f32
    %150 = vector.broadcast %cst_62 : f32 to vector<16x256xf32>
    %151 = arith.mulf %150, %149 : vector<16x256xf32>
    %152 = arith.addf %147, %151 : vector<16x256xf32>
    %cst_63 = arith.constant 0.797884583 : f32
    %153 = vector.broadcast %cst_63 : f32 to vector<16x256xf32>
    %154 = arith.mulf %153, %152 : vector<16x256xf32>
    %155 = math.tanh %154 : vector<16x256xf32>
    %cst_64 = arith.constant 1.000000e+00 : f32
    %156 = vector.broadcast %cst_64 : f32 to vector<16x256xf32>
    %157 = arith.addf %156, %155 : vector<16x256xf32>
    %cst_65 = arith.constant 5.000000e-01 : f32
    %158 = vector.broadcast %cst_65 : f32 to vector<16x256xf32>
    %159 = arith.mulf %158, %157 : vector<16x256xf32>
    %160 = arith.mulf %147, %159 : vector<16x256xf32>
    %161 = arith.truncf %160 : vector<16x256xf32> to vector<16x256xbf16>
    %c0_66 = arith.constant 0 : index
    %c0_67 = arith.constant 0 : index
    %c0_68 = arith.constant 0 : index
    %162 = vector.load %arg13[%c0_66, %c0_67, %c0_68] : memref<1x256x128xbf16, #tpu.memory_space<vmem>>, vector<1x256x128xbf16>
    %163 = vector.shape_cast %162 : vector<1x256x128xbf16> to vector<256x128xbf16>
    %cst_69 = arith.constant dense<0.000000e+00> : vector<16x128xf32>
    %164 = tpu.matmul %161, %163, %cst_69 {dimension_numbers = #tpu.dot_dimension_numbers<[1], [0], [0], [1], [0, 0, 1, 1], [], []>} : vector<16x256xbf16>, vector<256x128xbf16>, vector<16x128xf32> -> vector<16x128xf32>
    %c0_70 = arith.constant 0 : index
    %c0_71 = arith.constant 0 : index
    %c0_72 = arith.constant 0 : index
    %165 = vector.load %arg14[%c0_70, %c0_71, %c0_72] : memref<1x1x128xf32, #tpu.memory_space<vmem>>, vector<1x1x128xf32>
    %166 = vector.shape_cast %165 : vector<1x1x128xf32> to vector<1x128xf32>
    %167 = vector.broadcast %166 : vector<1x128xf32> to vector<16x128xf32>
    %168 = arith.addf %164, %167 : vector<16x128xf32>
    %169 = arith.addf %168, %139 : vector<16x128xf32>
    %c0_73 = arith.constant 0 : index
    %c0_74 = arith.constant 0 : index
    %c0_75 = arith.constant 0 : index
    %170 = vector.load %arg15[%c0_73, %c0_74, %c0_75] : memref<1x1x128xf32, #tpu.memory_space<vmem>>, vector<1x1x128xf32>
    %171 = vector.shape_cast %170 : vector<1x1x128xf32> to vector<1x128xf32>
    %c0_76 = arith.constant 0 : index
    %c0_77 = arith.constant 0 : index
    %c0_78 = arith.constant 0 : index
    %172 = vector.load %arg16[%c0_76, %c0_77, %c0_78] : memref<1x1x128xf32, #tpu.memory_space<vmem>>, vector<1x1x128xf32>
    %173 = vector.shape_cast %172 : vector<1x1x128xf32> to vector<1x128xf32>
    %cst_79 = arith.constant dense<0.000000e+00> : vector<16xf32>
    %174 = vector.multi_reduction <add>, %169, %cst_79 [1] : vector<16x128xf32> to vector<16xf32>
    %175 = vector.shape_cast %174 : vector<16xf32> to vector<16x1xf32>
    %cst_80 = arith.constant 1.280000e+02 : f32
    %176 = vector.broadcast %cst_80 : f32 to vector<16x1xf32>
    %177 = arith.divf %175, %176 : vector<16x1xf32>
    %178 = vector.broadcast %177 : vector<16x1xf32> to vector<16x128xf32>
    %179 = arith.subf %169, %178 : vector<16x128xf32>
    %180 = arith.mulf %179, %179 : vector<16x128xf32>
    %cst_81 = arith.constant dense<0.000000e+00> : vector<16xf32>
    %181 = vector.multi_reduction <add>, %180, %cst_81 [1] : vector<16x128xf32> to vector<16xf32>
    %182 = vector.shape_cast %181 : vector<16xf32> to vector<16x1xf32>
    %cst_82 = arith.constant 1.280000e+02 : f32
    %183 = vector.broadcast %cst_82 : f32 to vector<16x1xf32>
    %184 = arith.divf %182, %183 : vector<16x1xf32>
    %185 = vector.broadcast %177 : vector<16x1xf32> to vector<16x128xf32>
    %186 = arith.subf %169, %185 : vector<16x128xf32>
    %cst_83 = arith.constant 9.99999996E-13 : f32
    %187 = vector.broadcast %cst_83 : f32 to vector<16x1xf32>
    %188 = arith.addf %184, %187 : vector<16x1xf32>
    %189 = math.rsqrt %188 : vector<16x1xf32>
    %190 = vector.broadcast %189 : vector<16x1xf32> to vector<16x128xf32>
    %191 = arith.mulf %186, %190 : vector<16x128xf32>
    %192 = vector.broadcast %171 : vector<1x128xf32> to vector<16x128xf32>
    %193 = arith.mulf %191, %192 : vector<16x128xf32>
    %194 = vector.broadcast %173 : vector<1x128xf32> to vector<16x128xf32>
    %195 = arith.addf %193, %194 : vector<16x128xf32>
    %c0_84 = arith.constant 0 : index
    %c0_85 = arith.constant 0 : index
    %196 = vector.load %arg20[%c0_84, %c0_85] : memref<16x128xf32, #tpu.memory_space<vmem>>, vector<16x128xf32>
    tpu.vector_store %arg20[%c0_84, %c0_85], %195 {strides = array<i32>} : memref<16x128xf32, #tpu.memory_space<vmem>>, vector<16x128xf32>,
    %c1_i32 = arith.constant 1 : i32
    %197 = arith.cmpi eq, %arg0, %c1_i32 : i32
    %198 = arith.extui %197 : i1 to i32
    %c0_i32_86 = arith.constant 0 : i32
    %199 = arith.cmpi ne, %198, %c0_i32_86 : i32
    scf.if %199 {
      %200 = arith.truncf %195 : vector<16x128xf32> to vector<16x128xbf16>
      %c0_87 = arith.constant 0 : index
      %c0_88 = arith.constant 0 : index
      %201 = vector.load %arg17[%c0_87, %c0_88] : memref<128x128xbf16, #tpu.memory_space<vmem>>, vector<128x128xbf16>
      %cst_89 = arith.constant dense<0.000000e+00> : vector<16x128xf32>
      %202 = tpu.matmul %200, %201, %cst_89 {dimension_numbers = #tpu.dot_dimension_numbers<[1], [0], [0], [1], [0, 0, 1, 1], [], []>} : vector<16x128xbf16>, vector<128x128xbf16>, vector<16x128xf32> -> vector<16x128xf32>
      %c0_90 = arith.constant 0 : index
      %c0_91 = arith.constant 0 : index
      %203 = vector.load %arg18[%c0_90, %c0_91] : memref<1x128xf32, #tpu.memory_space<vmem>>, vector<1x128xf32>
      %204 = vector.broadcast %203 : vector<1x128xf32> to vector<16x128xf32>
      %205 = arith.addf %202, %204 : vector<16x128xf32>
      %c0_92 = arith.constant 0 : index
      %c0_93 = arith.constant 0 : index
      %206 = vector.load %arg19[%c0_92, %c0_93] : memref<16x128xf32, #tpu.memory_space<vmem>>, vector<16x128xf32>
      tpu.vector_store %arg19[%c0_92, %c0_93], %205 {strides = array<i32>} : memref<16x128xf32, #tpu.memory_space<vmem>>, vector<16x128xf32>,
    } else {
    }
    return
  }
  func.func @transform_0(%arg0: i32) -> (i32, i32) {
    %c0_i32 = arith.constant 0 : i32
    %c0_i32_0 = arith.constant 0 : i32
    %c0_i32_1 = arith.constant 0 : i32
    return %c0_i32, %c0_i32_0 : i32, i32
  }
  func.func @transform_1(%arg0: i32) -> (i32, i32) {
    %c0_i32 = arith.constant 0 : i32
    %c0_i32_0 = arith.constant 0 : i32
    %c0_i32_1 = arith.constant 0 : i32
    return %c0_i32, %c0_i32_0 : i32, i32
  }
  func.func @transform_2(%arg0: i32) -> (i32, i32) {
    %c0_i32 = arith.constant 0 : i32
    %c0_i32_0 = arith.constant 0 : i32
    %c0_i32_1 = arith.constant 0 : i32
    return %c0_i32, %c0_i32_0 : i32, i32
  }
  func.func @transform_3(%arg0: i32) -> (i32, i32, i32) {
    %c0_i32 = arith.constant 0 : i32
    %c0_i32_0 = arith.constant 0 : i32
    %c0_i32_1 = arith.constant 0 : i32
    %c0_i32_2 = arith.constant 0 : i32
    return %c0_i32, %c0_i32_0, %c0_i32_1 : i32, i32, i32
  }
  func.func @transform_4(%arg0: i32) -> (i32, i32, i32) {
    %c0_i32 = arith.constant 0 : i32
    %c0_i32_0 = arith.constant 0 : i32
    %c0_i32_1 = arith.constant 0 : i32
    return %arg0, %c0_i32, %c0_i32_0 : i32, i32, i32
  }
  func.func @transform_5(%arg0: i32) -> (i32, i32, i32) {
    %c0_i32 = arith.constant 0 : i32
    %c0_i32_0 = arith.constant 0 : i32
    %c0_i32_1 = arith.constant 0 : i32
    return %arg0, %c0_i32, %c0_i32_0 : i32, i32, i32
  }
  func.func @transform_6(%arg0: i32) -> (i32, i32, i32) {
    %c0_i32 = arith.constant 0 : i32
    %c0_i32_0 = arith.constant 0 : i32
    %c0_i32_1 = arith.constant 0 : i32
    return %arg0, %c0_i32, %c0_i32_0 : i32, i32, i32
  }
  func.func @transform_7(%arg0: i32) -> (i32, i32, i32) {
    %c0_i32 = arith.constant 0 : i32
    %c0_i32_0 = arith.constant 0 : i32
    %c0_i32_1 = arith.constant 0 : i32
    return %arg0, %c0_i32, %c0_i32_0 : i32, i32, i32
  }
  func.func @transform_8(%arg0: i32) -> (i32, i32, i32) {
    %c0_i32 = arith.constant 0 : i32
    %c0_i32_0 = arith.constant 0 : i32
    %c0_i32_1 = arith.constant 0 : i32
    return %arg0, %c0_i32, %c0_i32_0 : i32, i32, i32
  }
  func.func @transform_9(%arg0: i32) -> (i32, i32, i32) {
    %c0_i32 = arith.constant 0 : i32
    %c0_i32_0 = arith.constant 0 : i32
    %c0_i32_1 = arith.constant 0 : i32
    return %arg0, %c0_i32, %c0_i32_0 : i32, i32, i32
  }
  func.func @transform_10(%arg0: i32) -> (i32, i32, i32) {
    %c0_i32 = arith.constant 0 : i32
    %c0_i32_0 = arith.constant 0 : i32
    %c0_i32_1 = arith.constant 0 : i32
    return %arg0, %c0_i32, %c0_i32_0 : i32, i32, i32
  }
  func.func @transform_11(%arg0: i32) -> (i32, i32, i32) {
    %c0_i32 = arith.constant 0 : i32
    %c0_i32_0 = arith.constant 0 : i32
    %c0_i32_1 = arith.constant 0 : i32
    return %arg0, %c0_i32, %c0_i32_0 : i32, i32, i32
  }
  func.func @transform_12(%arg0: i32) -> (i32, i32, i32) {
    %c0_i32 = arith.constant 0 : i32
    %c0_i32_0 = arith.constant 0 : i32
    %c0_i32_1 = arith.constant 0 : i32
    return %arg0, %c0_i32, %c0_i32_0 : i32, i32, i32
  }
  func.func @transform_13(%arg0: i32) -> (i32, i32, i32) {
    %c0_i32 = arith.constant 0 : i32
    %c0_i32_0 = arith.constant 0 : i32
    %c0_i32_1 = arith.constant 0 : i32
    return %arg0, %c0_i32, %c0_i32_0 : i32, i32, i32
  }
  func.func @transform_14(%arg0: i32) -> (i32, i32, i32) {
    %c0_i32 = arith.constant 0 : i32
    %c0_i32_0 = arith.constant 0 : i32
    %c0_i32_1 = arith.constant 0 : i32
    return %arg0, %c0_i32, %c0_i32_0 : i32, i32, i32
  }
  func.func @transform_15(%arg0: i32) -> (i32, i32, i32) {
    %c0_i32 = arith.constant 0 : i32
    %c0_i32_0 = arith.constant 0 : i32
    %c0_i32_1 = arith.constant 0 : i32
    return %arg0, %c0_i32, %c0_i32_0 : i32, i32, i32
  }
  func.func @transform_16(%arg0: i32) -> (i32, i32) {
    %c0_i32 = arith.constant 0 : i32
    %c0_i32_0 = arith.constant 0 : i32
    %c0_i32_1 = arith.constant 0 : i32
    return %c0_i32, %c0_i32_0 : i32, i32
  }
  func.func @transform_17(%arg0: i32) -> (i32, i32) {
    %c0_i32 = arith.constant 0 : i32
    %c0_i32_0 = arith.constant 0 : i32
    %c0_i32_1 = arith.constant 0 : i32
    return %c0_i32, %c0_i32_0 : i32, i32
  }
  func.func @transform_18(%arg0: i32) -> (i32, i32) {
    %c0_i32 = arith.constant 0 : i32
    %c0_i32_0 = arith.constant 0 : i32
    %c0_i32_1 = arith.constant 0 : i32
    return %c0_i32, %c0_i32_0 : i32, i32
  }
}

</mosaic_0001>

<bundles_post_ra>
// kernel: bert_crf_forward.1
= control target key start
LH: loop header
LB: loop body
LE: loop exit
PB: predicated region body
PF: predicated region fallthrough
CT: control target
= control target key end

     0   :  { %s2886_s27 = smov 0   ;;  %s3224_s0 = inlined_call_operand.vmem [shape: f32[16,128], index: 0, kind: input, shape index: {}]   ;;  %s3225_s1 = inlined_call_operand.vmem [shape: f32[1,128], index: 1, kind: input, shape index: {}]   ;;  %s3226_s2 = inlined_call_operand.vmem [shape: f32[1,128], index: 2, kind: input, shape index: {}]   ;;  %s3227_s3 = inlined_call_operand.vmem [shape: f32[2,1,8], index: 3, kind: input, shape index: {}]   ;;  %s3228_s4 = inlined_call_operand.vmem [shape: bf16[2,128,384], index: 4, kind: input, shape index: {}]   ;;  %s3229_s5 = inlined_call_operand.vmem [shape: f32[2,1,384], index: 5, kind: input, shape index: {}]   ;;  %s3230_s6 = inlined_call_operand.vmem [shape: bf16[2,128,128], index: 6, kind: input, shape index: {}]   ;;  %s3231_s7 = inlined_call_operand.vmem [shape: f32[2,1,128], index: 7, kind: input, shape index: {}]   ;;  %s3232_s8 = inlined_call_operand.vmem [shape: f32[2,1,128], index: 8, kind: input, shape index: {}]   ;;  %s3233_s9 = inlined_call_operand.vmem [shape: f32[2,1,128], index: 9, kind: input, shape index: {}]   ;;  %s3234_s10 = inlined_call_operand.vmem [shape: bf16[2,128,256], index: 10, kind: input, shape index: {}]   ;;  %s3235_s11 = inlined_call_operand.vmem [shape: f32[2,1,256], index: 11, kind: input, shape index: {}]   ;;  %s3236_s12 = inlined_call_operand.vmem [shape: bf16[2,256,128], index: 12, kind: input, shape index: {}]   ;;  %s3237_s13 = inlined_call_operand.vmem [shape: f32[2,1,128], index: 13, kind: input, shape index: {}]   ;;  %s3238_s14 = inlined_call_operand.vmem [shape: f32[2,1,128], index: 14, kind: input, shape index: {}]   ;;  %s3239_s15 = inlined_call_operand.vmem [shape: f32[2,1,128], index: 15, kind: input, shape index: {}]   ;;  %s3240_s16 = inlined_call_operand.vmem [shape: bf16[128,128], index: 16, kind: input, shape index: {}]   ;;  %s3241_s17 = inlined_call_operand.vmem [shape: f32[1,128], index: 17, kind: input, shape index: {}]   ;;  %s3242_s18 = inlined_call_operand.vmem [shape: f32[16,128], index: 18, kind: output, shape index: {}]  }
   0x1   :  { %3248 = sst [smem:[#allocation5_spill]] %s3224_s0 }
   0x2   :  { %3249 = sst [smem:[#allocation6_spill]] %s3225_s1 }
   0x3   :  { %3250 = sst [smem:[#allocation7_spill]] %s3226_s2 }
   0x4   :  { %3251 = sst [smem:[#allocation8_spill]] %s3227_s3 }
   0x5   :  { %3252 = sst [smem:[#allocation9_spill]] %s3228_s4 }
   0x6   :  { %3253 = sst [smem:[#allocation10_spill]] %s3229_s5 }
   0x7   :  { %3254 = sst [smem:[#allocation11_spill]] %s3230_s6 }
   0x8   :  { %3255 = sst [smem:[#allocation12_spill]] %s3234_s10 }
   0x9   :  { %3256 = sst [smem:[#allocation13_spill]] %s3240_s16 }
   0xa   :  { %3257 = sst [smem:[#allocation14_spill]] %s3241_s17 }
   0xb   :  { %3258 = sst [smem:[#allocation15_spill]] %s3242_s18 }
   0xc LB: > { %3259 = sst [smem:[#allocation4_spill]] %s2783_s27  ;;  %s2892_s28 = sadd.s32 4294967295, %s2783_s27   ;;  %s2783_s27 = sphi %s2886_s27, %s28_s27  }
   0xd   : > { %p2356_p0 = scmp.ge.s32.totalorder %s2783_s27, 1  ;;  %p603_p1 = scmp.lt.s32.totalorder %s2783_s27, 3 }
   0xf   : > { %p604_p2 = pnand %p2356_p0, %p603_p1 }
  0x10   : > { %p693_p3 = scmp.lt.s32.totalorder (!%p604_p2), %s2892_s28, 1  ;;  %s3260_s6 = sld [smem:[#allocation11_spill]] (!%p604_p2) }
  0x11   : > { %607 = sbr.rel (%p604_p2) target bundleno = 3557 (0xde5), region = 92  ;;  %s3261_s4 = sld [smem:[#allocation9_spill]] (!%p604_p2) }
  0x12   : > { %s3262_s5 = sld [smem:[#allocation10_spill]] (!%p604_p2)  ;;  %s3263_s10 = sld [smem:[#allocation12_spill]] (!%p604_p2) }
  0x13   : > { %p2365_p4 = scmp.ne.s32.totalorder (!%p604_p2), %s2892_s28, 0 }
  0x18   : > { %s2898_s29 = scalar_select %p693_p3, %s2892_s28, 1 }
  0x19   : > { %s3264_s25 = sld [smem:[#allocation5_spill]] (!%p2365_p4)  ;;  %s3265_s1 = sld [smem:[#allocation6_spill]] (!%p2365_p4) }
  0x1a   : > { %s2637_s30 = smul.u32 192, %s2898_s29  ;;  %s2461_s0 = sshll.u32 %s2898_s29, 6 }
  0x1b   : > { %s2638_s19 = smul.u32 3, %s2898_s29  ;;  %s2906_s21 = scalar_lea.vmem %s3260_s6, %s2461_s0 }
  0x1c   : > { %s2911_s23 = scalar_lea.vmem %s3261_s4, %s2637_s30  ;;  %s2462_s22 = sshll.u32 %s2898_s29, 7 }
  0x1d   : > { %s2920_s17 = scalar_lea.vmem %s3262_s5, %s2638_s19  ;;  %s2934_s4 = scalar_lea.vmem %s3263_s10, %s2462_s22 }
  0x1e   : > { %s2362_s24 = sshll.u32 %s2898_s29, 1  ;;  %s2945_s3 = scalar_lea.vmem %s3236_s12, %s2462_s22 }
  0x1f   : > { %s2940_s18 = scalar_lea.vmem %s3235_s11, %s2362_s24  ;;  %s732_s20 = scalar_lea.vmem %s3237_s13, %s2898_s29  ;;  %v744_v0 = vld [vmem:[%s3264_s25] sm:$0xff] (!%p2365_p4)  ;;  %v745_v1 = vld [vmem:[%s3264_s25 + $0x8] sm:$0xff] (!%p2365_p4) }
  0x20   : > { %s735_s30 = scalar_lea.vmem %s3238_s14, %s2898_s29  ;;  %s738_s10 = scalar_lea.vmem %s3239_s15, %s2898_s29  ;;  %748 = vadd.xlane.f32.xlu0 (!%p2365_p4), %v744_v0  ;;  %v2366_v17 = vld [vmem:[%s3265_s1] ss:$0 sm:$0xff] (!%p2365_p4) }
  0x21   : > { %743 = sbr.rel (%p2365_p4) target bundleno = 348 (0x15c), region = 96  ;;  %s3266_s0 = sld [smem:[#allocation7_spill]] (!%p2365_p4) }
  0x24   : > { %750 = vadd.xlane.f32.xlu0 (!%p2365_p4), %v745_v1 }
  0x27   : > { %v2367_v19 = vld [vmem:[%s3266_s0] ss:$0 sm:$0xff] (!%p2365_p4) }
  0xad   : > { %v749_v2 = vpop.xlane.xlu0 %748 }
  0xae   : > { %v753_v3 = vmul.f32 0.0078125, %v749_v2 }
  0xb0   : > { %v755_v4 = vsub.f32 %v744_v0, %v753_v3 }
  0xb1   : > { %v751_v5 = vpop.xlane.xlu0 %750 }
  0xb2   : > { %v754_v6 = vmul.f32 0.0078125, %v751_v5  ;;  %v757_v7 = vmul.f32 %v755_v4, %v755_v4 }
  0xb4   : > { %v756_v8 = vsub.f32 %v745_v1, %v754_v6  ;;  %759 = vadd.xlane.f32.xlu1 %v757_v7 }
  0xb6   : > { %v758_v9 = vmul.f32 %v756_v8, %v756_v8 }
  0xb8   : > { %761 = vadd.xlane.f32.xlu1 %v758_v9 }
 0x141   : > { %v760_v10 = vpop.xlane.xlu1 %759 }
 0x142   : > { %v763_v11 = vmul.f32 0.0078125, %v760_v10 }
 0x144   : > { %v765_v12 = vadd.f32 1e-12, %v763_v11 }
 0x145   : > { %v762_v13 = vpop.xlane.xlu1 %761 }
 0x146   : > { %2653 = vrsqrt.f32 %v765_v12  ;;  %v764_v14 = vmul.f32 0.0078125, %v762_v13 }
 0x148   : > { %v766_v15 = vadd.f32 1e-12, %v764_v14 }
 0x14a   : > { %2655 = vrsqrt.f32 %v766_v15 }
 0x150   : > { %v2654_v16 = vpop.eup %2653 }
 0x151   : > { %v769_v18 = vmul.f32 %v2654_v16, %v755_v4 }
 0x153   : > { %v777_v20 = vmul.f32 %v2366_v17, %v769_v18 }
 0x154   : > { %v2656_v21 = vpop.eup %2655 }
 0x155   : > { %v785_v22 = vadd.f32 %v2367_v19, %v777_v20  ;;  %v770_v23 = vmul.f32 %v2656_v21, %v756_v8 }
 0x157   : > { %787 = vst [vmem:[#allocation2] sm:$0xff] %v785_v22  ;;  %v778_v24 = vmul.f32 %v2366_v17, %v770_v23 }
 0x159   : > { %v786_v25 = vadd.f32 %v2367_v19, %v778_v24 }
 0x15b   : > { %788 = vst [vmem:[#allocation2 + $0x8] sm:$0xff] %v786_v25 }
 0x15c PF: > { %v2657_v26 = vld [vmem:[%s2911_s23 + $0x4] ss:$12 sps:$4 sm:$0xff]   ;;  %v2659_v27 = vld [vmem:[%s2911_s23] ss:$12 sps:$4 sm:$0xff]   ;;  %v2785_v28 = vmov 0   ;;  %v2786_v29 = vmov 0.0   ;;  %v826_v55 = vlaneseq  ;;  %s3268_s5 = scalar_lea.vmem %s3231_s7, %s2898_s29  ;;  %s3269_s19 = scalar_lea.vmem %s3232_s8, %s2898_s29 }
 0x15d   : > { %1001 = vmatprep.mubr.bf16.mxu0 %v2785_v28  ;;  %2529 = vmatprep.subr.bf16.mxu1 %v2786_v29  ;;  %v2660_v30 = vld [vmem:[%s2911_s23 + $0x1c] ss:$12 sps:$4 sm:$0xff]   ;;  %v2662_v31 = vld [vmem:[%s2911_s23 + $0x18] ss:$12 sps:$4 sm:$0xff]   ;;  %v2663_v32 = vld [vmem:[%s2911_s23 + $0x34] ss:$12 sps:$4 sm:$0xff]   ;;  %s3270_s0 = scalar_lea.vmem %s3233_s9, %s2898_s29 }
 0x15e   : > { %969 = vmatprep.subr.bf16.mxu0 %v2657_v26  ;;  %v2665_v33 = vld [vmem:[%s2911_s23 + $0x30] ss:$12 sps:$4 sm:$0xff]   ;;  %v2666_v34 = vld [vmem:[%s2911_s23 + $0x4c] ss:$12 sps:$4 sm:$0xff]   ;;  %v2668_v35 = vld [vmem:[%s2911_s23 + $0x48] ss:$12 sps:$4 sm:$0xff]  }
 0x15f   : > { %970 = vmatpush1.bf16.msra.mxu0 %v2659_v27  ;;  %v2669_v36 = vld [vmem:[%s2911_s23 + $0x64] ss:$12 sps:$4 sm:$0xff]   ;;  %v2681_v37 = vld [vmem:[%s2911_s23 + $0x8] ss:$12 sps:$4 sm:$0xff]   ;;  %v2682_v38 = vld [vmem:[%s2911_s23 + $0x20] ss:$12 sps:$4 sm:$0xff]  }
 0x160   : > { %971 = vmatprep.subr.bf16.mxu0 %v2660_v30  ;;  %2530 = vmatpush3.bf16.msra.mxu1 %v2681_v37  ;;  %v2671_v39 = vld [vmem:[%s2911_s23 + $0x60] ss:$12 sps:$4 sm:$0xff]   ;;  %v2672_v40 = vld [vmem:[%s2911_s23 + $0x7c] ss:$12 sps:$4 sm:$0xff]   ;;  %v2683_v41 = vld [vmem:[%s2911_s23 + $0x38] ss:$12 sps:$4 sm:$0xff]  }
 0x161   : > { %2531 = vmatprep.subr.bf16.mxu1 %v2786_v29  ;;  %v2674_v42 = vld [vmem:[%s2911_s23 + $0x78] ss:$12 sps:$4 sm:$0xff]   ;;  %v2675_v43 = vld [vmem:[%s2911_s23 + $0x94] ss:$12 sps:$4 sm:$0xff]   ;;  %v2684_v44 = vld [vmem:[%s2911_s23 + $0x50] ss:$12 sps:$4 sm:$0xff]  }
 0x162   : > { %v2677_v45 = vld [vmem:[%s2911_s23 + $0x90] ss:$12 sps:$4 sm:$0xff]   ;;  %v2678_v46 = vld [vmem:[%s2911_s23 + $0xac] ss:$12 sps:$4 sm:$0xff]   ;;  %v2685_v47 = vld [vmem:[%s2911_s23 + $0x68] ss:$12 sps:$4 sm:$0xff]  }
 0x163   : > { %972 = vmatpush1.bf16.msra.mxu0 %v2662_v31  ;;  %v2680_v48 = vld [vmem:[%s2911_s23 + $0xa8] ss:$12 sps:$4 sm:$0xff]   ;;  %v2998_v49 = vld [vmem:[#allocation2] sm:$0xff]  ;;  %v2688_v54 = vld [vmem:[%s2911_s23 + $0xb0] ss:$12 sps:$4 sm:$0xff]   ;;  %vm2787_vm0 = vmmov 0  }
 0x164   : > { %973 = vmatprep.subr.bf16.mxu0 %v2663_v32  ;;  %2532 = vmatpush3.bf16.msra.mxu1 %v2682_v38  ;;  %v3000_v50 = vld [vmem:[#allocation2 + $0x8] sm:$0xff]  ;;  %v2687_v53 = vld [vmem:[%s2911_s23 + $0x98] ss:$12 sps:$4 sm:$0xff]   ;;  %v3019_v56 = vshrl.u32 %v826_v55, 7  ;;  %v824_v58 = vld [vmem:[%s2920_s17] sm:$0x7] }
 0x165   : > { %2533 = vmatprep.subr.bf16.mxu1 %v2786_v29  ;;  %v2686_v51 = vld [vmem:[%s2911_s23 + $0x80] ss:$12 sps:$4 sm:$0xff]   ;;  %v791_v52 = vpack.c.bf16 %v3000_v50, %v2998_v49  ;;  %2545 = vmatprep.mubr.msk.bf16.mxu1 %vm2787_vm0, %v2786_v29  ;;  %vm1063_vm1 = vcmask 523264   ;;  %s2788_s17 = smov 64   ;;  %vm1126_vm2 = vcmask 1043456   ;;  %s3267_s26 = sld [smem:[#allocation8_spill]] }
 0x166   : > { %v832_v57 = vsub.s32 1, %v3019_v56  ;;  %v828_v59 = vsub.s32 0, %v3019_v56  ;;  %v836_v12 = vsub.s32 2, %v3019_v56  ;;  %vm1110_vm3 = vcmask 64512   ;;  %p2449_p5 = scmp.ne.s32.totalorder %s2892_s28, 1 }
 0x167   : > { %974 = vmatpush1.bf16.msra.mxu0 %v2665_v33  ;;  %vm1288_vm4 = vcmask 1048064   ;;  %vm2790_vm5 = vmmov (!%p2449_p5), 0   ;;  %s3272_s23 = sld [smem:[#allocation14_spill]] (!%p2449_p5)  ;;  %s3273_s22 = sld [smem:[#allocation15_spill]] (!%p2449_p5) }
 0x168   : > { %975 = vmatprep.subr.bf16.mxu0 %v2666_v34  ;;  %2534 = vmatpush3.bf16.msra.mxu1 %v2683_v41  ;;  %v833_v60 = vrot.slane %v824_v58, %v832_v57  ;;  %v829_v61 = vrot.slane %v824_v58, %v828_v59  ;;  %v837_v13 = vrot.slane %v824_v58, %v836_v12 }
 0x169   : > { %2535 = vmatprep.subr.bf16.mxu1 %v2786_v29 }
 0x16b   : > { %976 = vmatpush1.bf16.msra.mxu0 %v2668_v35  ;;  %v2392_v22 = vld [vmem:[%s3267_s26] ss:$0 sm:$0xff] }
 0x16c   : > { %977 = vmatprep.subr.bf16.mxu0 %v2669_v36  ;;  %2536 = vmatpush3.bf16.msra.mxu1 %v2684_v44 }
 0x16d   : > { %2537 = vmatprep.subr.bf16.mxu1 %v2786_v29 }
 0x16f   : > { %978 = vmatpush1.bf16.msra.mxu0 %v2671_v39 }
 0x170   : > { %979 = vmatprep.subr.bf16.mxu0 %v2672_v40  ;;  %2538 = vmatpush3.bf16.msra.mxu1 %v2685_v47  ;;  %v2398_v40 = vld [vmem:[%s3267_s26 + $0x1] ss:$0 sm:$0xff] }
 0x171   : > { %2539 = vmatprep.subr.bf16.mxu1 %v2786_v29 }
 0x173   : > { %980 = vmatpush1.bf16.msra.mxu0 %v2674_v42 }
 0x174   : > { %981 = vmatprep.subr.bf16.mxu0 %v2675_v43  ;;  %2540 = vmatpush3.bf16.msra.mxu1 %v2686_v51 }
 0x175   : > { %2541 = vmatprep.subr.bf16.mxu1 %v2786_v29 }
 0x177   : > { %982 = vmatpush1.bf16.msra.mxu0 %v2677_v45 }
 0x178   : > { %983 = vmatprep.subr.bf16.mxu0 %v2678_v46  ;;  %2542 = vmatpush3.bf16.msra.mxu1 %v2687_v53 }
 0x179   : > { %2543 = vmatprep.subr.bf16.mxu1 %v2786_v29 }
 0x17b   : > { %984 = vmatpush1.bf16.msra.mxu0 %v2680_v48 }
 0x17c   : > { %2573 = vmatprep.subr.bf16.mxu0 %v2786_v29  ;;  %2544 = vmatpush3.bf16.msra.mxu1 %v2688_v54 }
 0x17d   : > { %2549 = vmatprep.subr.bf16.mxu1 %v2786_v29 }
 0x17e   : > { %1002 = vmatmul.mubr.bf16.vlgmr.msra.gmra.mrb[0].mxu0 %v791_v52 }
 0x17f   : > { %2575 = vmatprep.mubr.msk.bf16.mxu0 %vm2787_vm0, %v2786_v29  ;;  %2546 = vmatmul.mubr.bf16.vlgmr.msra.gmra.mrb[0].mxu1 %v791_v52 }
 0x180   : > { %2551 = vmatprep.mubr.msk.bf16.mxu1 %vm2787_vm0, %v2786_v29 }
 0x251   : > { %v1003_v62 = vpop.f32.mrb[0].mxu0 }
 0x252   : > { %v1005_v63 = vpop.f32.mrb[1].mxu0  ;;  %v1004_v3 = vadd.f32 %v1003_v62, %v829_v61  ;;  %v1046_v14 = vpop.f32.mrb[0].mxu1 }
 0x253   : > { %v1006_v0 = vadd.f32 %v1005_v63, %v833_v60  ;;  %v1007_v1 = vpop.f32.mrb[2].mxu0  ;;  %v1047_v15 = vadd.f32 %v1046_v14, %v837_v13  ;;  %v2547_v16 = vpop.f32.mrb[1].mxu1 }
 0x254   : > { %v1009_v2 = vpop.f32.mrb[3].mxu0  ;;  %v1054_v8 = vpack.c.bf16 %v1004_v3, %v1004_v3  ;;  %v1008_v9 = vadd.f32 %v1007_v1, %v829_v61  ;;  %v1049_v17 = vpop.f32.mrb[2].mxu1 }
 0x255   : > { %v1055_v4 = vpack.c.bf16 %v1006_v0, %v1006_v0  ;;  %v1010_v5 = vadd.f32 %v1009_v2, %v833_v60  ;;  %v1056_v18 = vpack.c.bf16 %v1047_v15, %v1047_v15  ;;  %v3042_v19 = vadd.f32 %v1049_v17, %v837_v13  ;;  %v2548_v20 = vpop.f32.mrb[3].mxu1 }
 0x256   : > { %v1292_v11 = vpack.c.bf16 %v1008_v9, %v1008_v9 }
 0x257   : > { %v1068_v6 = vsel %vm1063_vm1, %v1055_v4, 0  ;;  %v1293_v7 = vpack.c.bf16 %v1010_v5, %v1010_v5  ;;  %1175 = vrot.lane.b32.xlu1 %v1055_v4, %s2788_s17  ;;  %v1128_v21 = vsel %vm1126_vm2, %v1056_v18, 0 }
 0x258   : > { %2550 = vmatpush3.bf16.xpose.msra.mxu1 %v1068_v6 }
 0x259   : > { %v1305_v10 = vsel %vm1063_vm1, %v1293_v7, 0  ;;  %2555 = vmatprep.subr.bf16.mxu1 %v2786_v29 }
 0x25a   : > { %2574 = vmatpush3.bf16.xpose.msra.mxu0 %v1305_v10 }
 0x25b   : > { %1172 = vrot.lane.b32.xlu1 %v1054_v8, %s2788_s17  ;;  %2585 = vmatprep.subr.bf16.mxu0 %v2786_v29 }
 0x25f   : > { %1407 = vrot.lane.b32.xlu1 %v1292_v11, %s2788_s17  ;;  %2552 = vmatmul.mubr.msk.bf16.vlgmr.msra.gmra.mrb[4].mxu1 %vm1063_vm1, %v1054_v8 }
 0x260   : > { %2557 = vmatprep.mubr.msk.bf16.mxu1 %vm2787_vm0, %v2786_v29  ;;  %2556 = vmatpush3.bf16.msra.mxu1 %v1128_v21 }
 0x261   : > { %2576 = vmatmul.mubr.msk.bf16.vlgmr.msra.gmra.mrb[4].mxu0 %vm1063_vm1, %v1292_v11  ;;  %2561 = vmatprep.subr.bf16.mxu1 %v2786_v29 }
 0x262   : > { %2587 = vmatprep.mubr.msk.bf16.mxu0 %vm2787_vm0, %v2786_v29 }
 0x2c9   : > { %v1176_v43 = vpop.permute.xlu1 %1175 }
 0x2ca   : > { %v1181_v54 = vsel %vm1063_vm1, %v1176_v43, 0 }
 0x2cd   : > { %v1173_v47 = vpop.permute.xlu1 %1172 }
 0x2d1   : > { %v1408_v51 = vpop.permute.xlu1 %1407 }
 0x332   : > { %v1104_v23 = vpop.f32.mrb[4].mxu1 }
 0x333   : > { %v1105_v24 = vadd.f32 %v2392_v22, %v1104_v23  ;;  %v2553_v25 = vpop.f32.mrb[5].mxu1 }
 0x334   : > { %v1107_v26 = vpop.f32.mrb[6].mxu1  ;;  %v1341_v27 = vpop.f32.mrb[4].mxu0 }
 0x335   : > { %v2554_v30 = vpop.f32.mrb[7].mxu1  ;;  %v2577_v31 = vpop.f32.mrb[5].mxu0  ;;  %v1111_v32 = vsel %vm1110_vm3, %v1105_v24, -inf  ;;  %v1342_v41 = vadd.f32 %v2398_v40, %v1341_v27 }
 0x336   : > { %v1344_v33 = vpop.f32.mrb[6].mxu0  ;;  %1112 = vmax.xlane.f32.xlu0 %v1111_v32  ;;  %v1294_v30 = vpack.c.bf16 %v3042_v19, %v3042_v19 }
 0x337   : > { %v2578_v34 = vpop.f32.mrb[7].mxu0  ;;  %v1347_v42 = vsel %vm1110_vm3, %v1342_v41, -inf }
 0x3c3   : > { %v1113_v35 = vpop.xlane.xlu0 %1112 }
 0x3c4   : > { %v1114_v36 = vsub.f32 %v1105_v24, %v1113_v35 }
 0x3c6   : > { %v1115_v37 = vmul.f32 1.442695, %v1114_v36 }
 0x3c8   : > { %2737 = vpow2.f32 %v1115_v37 }
 0x3d2   : > { %v2738_v38 = vpop.eup %2737 }
 0x3d3   : > { %v1117_v39 = vsel %vm1110_vm3, %v2738_v38, 0.0 }
 0x3d4   : > { %1118 = vadd.xlane.f32.xlu0 %v1117_v39 }
 0x3ea   : > { %1410 = vrot.lane.b32.xlu0 %v1293_v7, %s2788_s17 }
 0x409   : > { %1348 = vmax.xlane.f32.xlu0 %v1347_v42 }
 0x41f   : > { %1236 = vrot.lane.b32.xlu0 %v1056_v18, %s2788_s17 }
 0x461   : > { %v1119_v44 = vpop.xlane.xlu0 %1118 }
 0x462   : > { %2739 = vrcp.f32 %v1119_v44 }
 0x465   : > { %v1411_v45 = vpop.permute.xlu0 %1410 }
 0x466   : > { %v1416_v46 = vsel %vm1063_vm1, %v1411_v45, 0  ;;  %v2689_v45 = vld [vmem:[%s2906_s21] sm:$0xff]  }
 0x467   : > { %2586 = vmatpush3.bf16.xpose.msra.mxu0 %v1416_v46  ;;  %v2690_v46 = vld [vmem:[%s2906_s21 + $0x8] sm:$0xff]  }
 0x468   : > { %2597 = vmatprep.subr.bf16.mxu0 %v2786_v29 }
 0x46c   : > { %v2740_v48 = vpop.eup %2739 }
 0x46d   : > { %v1121_v52 = vmul.f32 %v2740_v48, %v2738_v38  ;;  %v1363_v38 = vsel %vm1126_vm2, %v1294_v30, 0  ;;  %v2692_v48 = vld [vmem:[%s2906_s21 + $0x18] sm:$0xff]  }
 0x46e   : > { %2588 = vmatmul.mubr.msk.bf16.vlgmr.msra.gmra.mrb[8].mxu0 %vm1063_vm1, %v1408_v51  ;;  %v2693_v51 = vld [vmem:[%s2906_s21 + $0x20] sm:$0xff]  }
 0x46f   : > { %v1122_v53 = vpack.c.bf16 %v1121_v52, %v1121_v52  ;;  %2613 = vmatprep.mubr.msk.bf16.mxu0 %vm2787_vm0, %v2786_v29  ;;  %2598 = vmatpush3.bf16.msra.mxu0 %v2689_v45 }
 0x470   : > { %2599 = vmatprep.subr.bf16.mxu0 %v2786_v29 }
 0x471   : > { %2558 = vmatmul.mubr.msk.bf16.vlgmr.msra.gmra.mrb[8].mxu1 %vm1110_vm3, %v1122_v53 }
 0x472   : > { %2562 = vmatpush3.bf16.xpose.msra.mxu1 %v1181_v54  ;;  %2563 = vmatprep.mubr.msk.bf16.mxu1 %vm2787_vm0, %v2786_v29 }
 0x473   : > { %2567 = vmatprep.subr.bf16.mxu1 %v2786_v29  ;;  %2600 = vmatpush3.bf16.msra.mxu0 %v2690_v46 }
 0x474   : > { %2601 = vmatprep.subr.bf16.mxu0 %v2786_v29 }
 0x479   : > { %2564 = vmatmul.mubr.msk.bf16.vlgmr.msra.gmra.mrb[12].mxu1 %vm1063_vm1, %v1173_v47  ;;  %v2691_v47 = vld [vmem:[%s2906_s21 + $0x10] sm:$0xff]  }
 0x47a   : > { %2569 = vmatprep.mubr.msk.bf16.mxu1 %vm2787_vm0, %v2786_v29  ;;  %2602 = vmatpush3.bf16.msra.mxu0 %v2691_v47 }
 0x47b   : > { %2603 = vmatprep.subr.bf16.mxu0 %v2786_v29 }
 0x47e   : > { %2604 = vmatpush3.bf16.msra.mxu0 %v2692_v48 }
 0x47f   : > { %2605 = vmatprep.subr.bf16.mxu0 %v2786_v29 }
 0x482   : > { %2606 = vmatpush3.bf16.msra.mxu0 %v2693_v51  ;;  %v2412_v51 = vld [vmem:[%s3269_s19] ss:$0 sm:$0xff] }
 0x483   : > { %2607 = vmatprep.subr.bf16.mxu0 %v2786_v29 }
 0x496   : > { %v1349_v55 = vpop.xlane.xlu0 %1348 }
 0x497   : > { %v1350_v13 = vsub.f32 %v1342_v41, %v1349_v55 }
 0x499   : > { %v1351_v16 = vmul.f32 1.442695, %v1350_v13 }
 0x49a   : > { %v1237_v58 = vpop.permute.xlu0 %1236 }
 0x49b   : > { %v1242_v60 = vsel %vm1126_vm2, %v1237_v58, 0  ;;  %v2695_v58 = vld [vmem:[%s2906_s21 + $0x30] sm:$0xff]  }
 0x49c   : > { %2568 = vmatpush3.bf16.msra.mxu1 %v1242_v60  ;;  %v2696_v60 = vld [vmem:[%s2906_s21 + $0x38] sm:$0xff]  }
 0x49d   : > { %2579 = vmatprep.subr.bf16.mxu1 %v2786_v29 }
 0x541   : > { %v1452_v61 = vpop.f32.mrb[8].mxu0 }
 0x542   : > { %v2589_v62 = vpop.f32.mrb[9].mxu0  ;;  %v1453_v9 = vadd.f32 %v2398_v40, %v1452_v61 }
 0x543   : > { %v1455_v63 = vpop.f32.mrb[10].mxu0 }
 0x544   : > { %v1164_v0 = vpop.f32.mrb[8].mxu1  ;;  %v2590_v1 = vpop.f32.mrb[11].mxu0  ;;  %v1458_v12 = vsel %vm1110_vm3, %v1453_v9, -inf }
 0x545   : > { %1170 = vst.msk [vmem:[#allocation3] sm:$0xff] %vm1063_vm1, %v1164_v0  ;;  %v2559_v2 = vpop.f32.mrb[9].mxu1 }
 0x546   : > { %v1167_v3 = vpop.f32.mrb[10].mxu1 }
 0x547   : > { %v2560_v4 = vpop.f32.mrb[11].mxu1 }
 0x54c   : > { %v1217_v5 = vpop.f32.mrb[12].mxu1 }
 0x54d   : > { %v1218_v6 = vadd.f32 %v2392_v22, %v1217_v5  ;;  %v2565_v7 = vpop.f32.mrb[13].mxu1 }
 0x54e   : > { %v1220_v8 = vpop.f32.mrb[14].mxu1 }
 0x54f   : > { %v2566_v10 = vpop.f32.mrb[15].mxu1  ;;  %v1223_v11 = vsel %vm1110_vm3, %v1218_v6, -inf }
 0x550   : > { %1224 = vmax.xlane.f32.xlu1 %v1223_v11 }
 0x554   : > { %1459 = vmax.xlane.f32.xlu1 %v1458_v12 }
 0x5dd   : > { %v1225_v14 = vpop.xlane.xlu1 %1224 }
 0x5de   : > { %v1226_v15 = vsub.f32 %v1218_v6, %v1225_v14 }
 0x5e0   : > { %v1227_v17 = vmul.f32 1.442695, %v1226_v15 }
 0x5e1   : > { %v1460_v18 = vpop.xlane.xlu1 %1459 }
 0x5e2   : > { %2741 = vpow2.f32 %v1227_v17  ;;  %v1461_v20 = vsub.f32 %v1453_v9, %v1460_v18  ;;  %v2403_v9 = vld [vmem:[%s3268_s5] ss:$0 sm:$0xff] }
 0x5e3   : > { %2743 = vpow2.f32 %v1351_v16  ;;  %v2697_v18 = vld [vmem:[%s2934_s4] ss:$8 sps:$4 sm:$0xff]  }
 0x5e4   : > { %v1462_v21 = vmul.f32 1.442695, %v1461_v20  ;;  %v2699_v20 = vld [vmem:[%s2934_s4 + $0x4] ss:$8 sps:$4 sm:$0xff]  }
 0x5e6   : > { %2745 = vpow2.f32 %v1462_v21  ;;  %v2702_v21 = vld [vmem:[%s2934_s4 + $0x14] ss:$8 sps:$4 sm:$0xff]  }
 0x5ec   : > { %v2742_v22 = vpop.eup %2741 }
 0x5ed   : > { %v1229_v23 = vsel %vm1110_vm3, %v2742_v22, 0.0  ;;  %v2744_v24 = vpop.eup %2743 }
 0x5ee   : > { %1230 = vadd.xlane.f32.xlu1 %v1229_v23  ;;  %v1353_v25 = vsel %vm1110_vm3, %v2744_v24, 0.0 }
 0x5f0   : > { %v2746_v26 = vpop.eup %2745 }
 0x5f1   : > { %v1464_v27 = vsel %vm1110_vm3, %v2746_v26, 0.0 }
 0x5f2   : > { %1354 = vadd.xlane.f32.xlu1 %v1353_v25 }
 0x5f6   : > { %1465 = vadd.xlane.f32.xlu1 %v1464_v27 }
 0x607   : > { %1471 = vrot.lane.b32.xlu1 %v1294_v30, %s2788_s17 }
 0x67b   : > { %v1231_v31 = vpop.xlane.xlu1 %1230 }
 0x67c   : > { %2747 = vrcp.f32 %v1231_v31  ;;  %v2705_v31 = vld [vmem:[%s2934_s4 + $0x24] ss:$8 sps:$4 sm:$0xff]  }
 0x67f   : > { %v1355_v32 = vpop.xlane.xlu1 %1354 }
 0x680   : > { %2749 = vrcp.f32 %v1355_v32  ;;  %v2703_v32 = vld [vmem:[%s2934_s4 + $0x20] ss:$8 sps:$4 sm:$0xff]  }
 0x683   : > { %v1466_v33 = vpop.xlane.xlu1 %1465 }
 0x684   : > { %2751 = vrcp.f32 %v1466_v33  ;;  %v2708_v33 = vld [vmem:[%s2934_s4 + $0x34] ss:$8 sps:$4 sm:$0xff]  }
 0x686   : > { %v2748_v34 = vpop.eup %2747 }
 0x687   : > { %v1233_v35 = vmul.f32 %v2748_v34, %v2742_v22  ;;  %v1472_v39 = vpop.permute.xlu1 %1471  ;;  %v2700_v22 = vld [vmem:[%s2934_s4 + $0x10] ss:$8 sps:$4 sm:$0xff]  }
 0x688   : > { %v1477_v42 = vsel %vm1126_vm2, %v1472_v39, 0  ;;  %v2706_v34 = vld [vmem:[%s2934_s4 + $0x30] ss:$8 sps:$4 sm:$0xff]   ;;  %v2715_v39 = vld [vmem:[%s2934_s4 + $0x60] ss:$8 sps:$4 sm:$0xff]  }
 0x689   : > { %v1234_v36 = vpack.c.bf16 %v1233_v35, %v1233_v35  ;;  %v2711_v35 = vld [vmem:[%s2934_s4 + $0x44] ss:$8 sps:$4 sm:$0xff]  }
 0x68a   : > { %v2750_v37 = vpop.eup %2749 }
 0x68b   : > { %2570 = vmatmul.mubr.msk.bf16.vlgmr.msra.gmra.mrb[16].mxu1 %vm1110_vm3, %v1234_v36  ;;  %v1357_v19 = vmul.f32 %v2750_v37, %v2744_v24  ;;  %v2709_v36 = vld [vmem:[%s2934_s4 + $0x40] ss:$8 sps:$4 sm:$0xff]   ;;  %v2714_v37 = vld [vmem:[%s2934_s4 + $0x54] ss:$8 sps:$4 sm:$0xff]  }
 0x68c   : > { %2580 = vmatpush3.bf16.msra.mxu1 %v1363_v38  ;;  %2581 = vmatprep.mubr.msk.bf16.mxu1 %vm2787_vm0, %v2786_v29  ;;  %v2712_v38 = vld [vmem:[%s2934_s4 + $0x50] ss:$8 sps:$4 sm:$0xff]  }
 0x68d   : > { %2591 = vmatprep.subr.bf16.mxu1 %v2786_v29  ;;  %v1358_v40 = vpack.c.bf16 %v1357_v19, %v1357_v19  ;;  %v2717_v19 = vld [vmem:[%s2934_s4 + $0x64] ss:$8 sps:$4 sm:$0xff]  }
 0x68e   : > { %v2752_v41 = vpop.eup %2751 }
 0x68f   : > { %v1468_v43 = vmul.f32 %v2752_v41, %v2746_v26  ;;  %v2718_v41 = vld [vmem:[%s2934_s4 + $0x70] ss:$8 sps:$4 sm:$0xff]  }
 0x691   : > { %v1469_v44 = vpack.c.bf16 %v1468_v43, %v1468_v43 }
 0x693   : > { %2582 = vmatmul.mubr.msk.bf16.vlgmr.msra.gmra.mrb[20].mxu1 %vm1110_vm3, %v1358_v40  ;;  %v2720_v40 = vld [vmem:[%s2934_s4 + $0x74] ss:$8 sps:$4 sm:$0xff]  }
 0x694   : > { %2592 = vmatpush3.bf16.msra.mxu1 %v1477_v42  ;;  %2593 = vmatprep.mubr.msk.bf16.mxu1 %vm2787_vm0, %v2786_v29 }
 0x695   : > { %1791 = vmatprep.subr.bf16.mxu1 %v2699_v20 }
 0x69b   : > { %2594 = vmatmul.mubr.msk.bf16.vlgmr.msra.gmra.mrb[24].mxu1 %vm1110_vm3, %v1469_v44 }
 0x69c   : > { %1823 = vmatprep.mubr.bf16.mxu1 %v2785_v28  ;;  %v2694_v28 = vld [vmem:[%s2906_s21 + $0x28] sm:$0xff]   ;;  %1792 = vmatpush1.bf16.msra.mxu1 %v2697_v18 }
 0x69d   : > { %2608 = vmatpush3.bf16.msra.mxu0 %v2694_v28  ;;  %1793 = vmatprep.subr.bf16.mxu1 %v2702_v21 }
 0x69e   : > { %2609 = vmatprep.subr.bf16.mxu0 %v2786_v29 }
 0x6a0   : > { %1794 = vmatpush1.bf16.msra.mxu1 %v2700_v22 }
 0x6a1   : > { %2610 = vmatpush3.bf16.msra.mxu0 %v2695_v58  ;;  %1795 = vmatprep.subr.bf16.mxu1 %v2705_v31 }
 0x6a2   : > { %2611 = vmatprep.subr.bf16.mxu0 %v2786_v29 }
 0x6a4   : > { %1796 = vmatpush1.bf16.msra.mxu1 %v2703_v32 }
 0x6a5   : > { %2612 = vmatpush3.bf16.msra.mxu0 %v2696_v60  ;;  %1797 = vmatprep.subr.bf16.mxu1 %v2708_v33 }
 0x6a8   : > { %1798 = vmatpush1.bf16.msra.mxu1 %v2706_v34 }
 0x6a9   : > { %1799 = vmatprep.subr.bf16.mxu1 %v2711_v35 }
 0x6ac   : > { %1800 = vmatpush1.bf16.msra.mxu1 %v2709_v36 }
 0x6ad   : > { %1801 = vmatprep.subr.bf16.mxu1 %v2714_v37 }
 0x6b0   : > { %1802 = vmatpush1.bf16.msra.mxu1 %v2712_v38 }
 0x6b1   : > { %1803 = vmatprep.subr.bf16.mxu1 %v2717_v19 }
 0x6b4   : > { %1804 = vmatpush1.bf16.msra.mxu1 %v2715_v39 }
 0x6b5   : > { %1805 = vmatprep.subr.bf16.mxu1 %v2720_v40 }
 0x6b8   : > { %1806 = vmatpush1.bf16.msra.mxu1 %v2718_v41 }
 0x75e   : > { %v1278_v52 = vpop.f32.mrb[16].mxu1 }
 0x75f   : > { %1285 = vrot.lane.b32.xlu1 %v1278_v52, %s2788_s17  ;;  %v2571_v53 = vpop.f32.mrb[17].mxu1 }
 0x760   : > { %v1281_v54 = vpop.f32.mrb[18].mxu1 }
 0x761   : > { %v2572_v55 = vpop.f32.mrb[19].mxu1 }
 0x762   : > { %v2413_v55 = vld [vmem:[%s3270_s0] ss:$0 sm:$0xff] }
 0x766   : > { %v1399_v61 = vpop.f32.mrb[20].mxu1 }
 0x767   : > { %1405 = vst.msk [vmem:[#allocation3 + $0x8] sm:$0xff] %vm1063_vm1, %v1399_v61  ;;  %v2583_v62 = vpop.f32.mrb[21].mxu1 }
 0x768   : > { %v1402_v63 = vpop.f32.mrb[22].mxu1 }
 0x769   : > { %v2584_v0 = vpop.f32.mrb[23].mxu1  ;;  %v2721_v63 = vld [vmem:[%s2945_s3 + $0x40] sm:$0xff]  }
 0x76a   : > { %v2722_v0 = vld [vmem:[%s2945_s3] sm:$0xff]   ;;  %2498 = vmatprep.subr.bf16.mxu0 %v2721_v63 }
 0x76e   : > { %v1513_v1 = vpop.f32.mrb[24].mxu1 }
 0x76f   : > { %1520 = vrot.lane.b32.xlu0 %v1513_v1, %s2788_s17  ;;  %v2595_v2 = vpop.f32.mrb[25].mxu1  ;;  %v2723_v1 = vld [vmem:[%s2945_s3 + $0x48] sm:$0xff]  }
 0x770   : > { %v1516_v3 = vpop.f32.mrb[26].mxu1  ;;  %v2724_v2 = vld [vmem:[%s2945_s3 + $0x8] sm:$0xff]  }
 0x771   : > { %v2596_v4 = vpop.f32.mrb[27].mxu1  ;;  %v2725_v3 = vld [vmem:[%s2945_s3 + $0x50] sm:$0xff]  }
 0x772   : > { %v2726_v4 = vld [vmem:[%s2945_s3 + $0x10] sm:$0xff]  }
 0x7d1   : > { %v1286_v5 = vpop.permute.xlu1 %1285 }
 0x7d2   : > { %1289 = vst.msk [vmem:[#allocation3] sm:$0xff] %vm1288_vm4, %v1286_v5  ;;  %v2727_v5 = vld [vmem:[%s2945_s3 + $0x58] sm:$0xff]  }
 0x7d9   : > { %v1524_v29 = vld [vmem:[#allocation3] sm:$0xff] }
 0x7e1   : > { %v1521_v6 = vpop.permute.xlu0 %1520 }
 0x7e2   : > { %1523 = vst.msk [vmem:[#allocation3 + $0x8] sm:$0xff] %vm1288_vm4, %v1521_v6  ;;  %v2728_v6 = vld [vmem:[%s2945_s3 + $0x18] sm:$0xff]  }
 0x7e9   : > { %v1525_v7 = vld [vmem:[#allocation3 + $0x8] sm:$0xff] }
 0x7ea   : > { %v1526_v8 = vpack.c.bf16 %v1525_v7, %v1524_v29  ;;  %v2729_v29 = vld [vmem:[%s2945_s3 + $0x60] sm:$0xff]  }
 0x7eb   : > { %v2730_v7 = vld [vmem:[%s2945_s3 + $0x20] sm:$0xff]  }
 0x7ec   : > { %2614 = vmatmul.mubr.bf16.vlgmr.msra.gmra.mrb[12].mxu0 %v1526_v8  ;;  %v2731_v8 = vld [vmem:[%s2945_s3 + $0x68] sm:$0xff]  }
 0x7ed   : > { %2499 = vmatpush3.bf16.msra.mxu0 %v2722_v0 }
 0x7ee   : > { %2500 = vmatprep.subr.bf16.mxu0 %v2723_v1 }
 0x7f1   : > { %2501 = vmatpush3.bf16.msra.mxu0 %v2724_v2 }
 0x7f2   : > { %2502 = vmatprep.subr.bf16.mxu0 %v2725_v3  ;;  %v2430_v3 = vld [vmem:[%s732_s20] ss:$0 sm:$0xff] }
 0x7f5   : > { %2503 = vmatpush3.bf16.msra.mxu0 %v2726_v4 }
 0x7f6   : > { %2504 = vmatprep.subr.bf16.mxu0 %v2727_v5 }
 0x7f9   : > { %2505 = vmatpush3.bf16.msra.mxu0 %v2728_v6 }
 0x7fa   : > { %2506 = vmatprep.subr.bf16.mxu0 %v2729_v29 }
 0x7fd   : > { %2507 = vmatpush3.bf16.msra.mxu0 %v2730_v7 }
 0x7fe   : > { %2508 = vmatprep.subr.bf16.mxu0 %v2731_v8 }
 0x8bf   : > { %v1632_v10 = vpop.f32.mrb[12].mxu0 }
 0x8c0   : > { %v1633_v11 = vadd.f32 %v2403_v9, %v1632_v10  ;;  %v2615_v12 = vpop.f32.mrb[13].mxu0  ;;  %v2733_v10 = vld [vmem:[%s2945_s3 + $0x70] sm:$0xff]  }
 0x8c1   : > { %v1635_v13 = vpop.f32.mrb[14].mxu0  ;;  %v2735_v12 = vld [vmem:[%s2945_s3 + $0x78] sm:$0xff]  }
 0x8c2   : > { %v1636_v14 = vadd.f32 %v2403_v9, %v1635_v13  ;;  %v2616_v15 = vpop.f32.mrb[15].mxu0  ;;  %v1639_v16 = vadd.f32 %v1633_v11, %v2998_v49  ;;  %v2732_v9 = vld [vmem:[%s2945_s3 + $0x28] sm:$0xff]   ;;  %v2734_v11 = vld [vmem:[%s2945_s3 + $0x30] sm:$0xff]   ;;  %v2736_v13 = vld [vmem:[%s2945_s3 + $0x38] sm:$0xff]  }
 0x8c3   : > { %2509 = vmatpush3.bf16.msra.mxu0 %v2732_v9 }
 0x8c4   : > { %1643 = vadd.xlane.f32.xlu1 %v1639_v16  ;;  %v1640_v17 = vadd.f32 %v1636_v14, %v3000_v50  ;;  %2510 = vmatprep.subr.bf16.mxu0 %v2733_v10  ;;  %v1699_v14 = vld [vmem:[%s2940_s18] sm:$0x3] }
 0x8c5   : > { %v1704_v15 = vrot.slane %v1699_v14, %v828_v59 }
 0x8c6   : > { %1645 = vadd.xlane.f32.xlu0 %v1640_v17 }
 0x8c7   : > { %2511 = vmatpush3.bf16.msra.mxu0 %v2734_v11 }
 0x8c8   : > { %2512 = vmatprep.subr.bf16.mxu0 %v2735_v12 }
 0x8cb   : > { %2513 = vmatpush3.bf16.msra.mxu0 %v2736_v13 }
 0x951   : > { %v1644_v23 = vpop.xlane.xlu1 %1643 }
 0x952   : > { %v1648_v24 = vmul.f32 0.0078125, %v1644_v23 }
 0x953   : > { %v1646_v25 = vpop.xlane.xlu0 %1645 }
 0x954   : > { %v1650_v49 = vsub.f32 %v1639_v16, %v1648_v24  ;;  %v1649_v50 = vmul.f32 0.0078125, %v1646_v25  ;;  %v1708_v16 = vrot.slane %v1699_v14, %v832_v57 }
 0x956   : > { %v1651_v26 = vsub.f32 %v1640_v17, %v1649_v50  ;;  %v1652_v27 = vmul.f32 %v1650_v49, %v1650_v49 }
 0x958   : > { %1654 = vadd.xlane.f32.xlu0 %v1652_v27  ;;  %v1653_v30 = vmul.f32 %v1651_v26, %v1651_v26 }
 0x95a   : > { %1656 = vadd.xlane.f32.xlu1 %v1653_v30 }
 0x9e5   : > { %v1655_v42 = vpop.xlane.xlu0 %1654 }
 0x9e6   : > { %v1658_v43 = vmul.f32 0.0078125, %v1655_v42 }
 0x9e7   : > { %v1657_v44 = vpop.xlane.xlu1 %1656 }
 0x9e8   : > { %v1660_v45 = vadd.f32 1e-12, %v1658_v43  ;;  %v1659_v46 = vmul.f32 0.0078125, %v1657_v44 }
 0x9ea   : > { %2753 = vrsqrt.f32 %v1660_v45  ;;  %v1661_v47 = vadd.f32 1e-12, %v1659_v46 }
 0x9ec   : > { %2755 = vrsqrt.f32 %v1661_v47 }
 0x9f4   : > { %v2754_v48 = vpop.eup %2753 }
 0x9f5   : > { %v1664_v28 = vmul.f32 %v2754_v48, %v1650_v49 }
 0x9f6   : > { %v2756_v52 = vpop.eup %2755 }
 0x9f7   : > { %v1665_v53 = vmul.f32 %v2756_v52, %v1651_v26  ;;  %v1672_v54 = vmul.f32 %v2412_v51, %v1664_v28 }
 0x9f9   : > { %v1673_v58 = vmul.f32 %v2412_v51, %v1665_v53  ;;  %v3143_v60 = vadd.f32 %v2413_v55, %v1672_v54 }
 0x9fb   : > { %v3145_v61 = vadd.f32 %v2413_v55, %v1673_v58 }
 0x9fd   : > { %v1682_v62 = vpack.c.bf16 %v3145_v61, %v3143_v60 }
 0x9ff   : > { %1824 = vmatmul.mubr.bf16.vlgmr.msra.gmra.mrb[28].mxu1 %v1682_v62 }
 0xad2   : > { %v1825_v17 = vpop.f32.mrb[28].mxu1 }
 0xad3   : > { %v1826_v18 = vadd.f32 %v1825_v17, %v1704_v15  ;;  %v1827_v20 = vpop.f32.mrb[29].mxu1 }
 0xad4   : > { %v1828_v21 = vadd.f32 %v1827_v20, %v1708_v16  ;;  %v1829_v22 = vpop.f32.mrb[30].mxu1 }
 0xad5   : > { %v1834_v23 = vmul.f32 %v1826_v18, %v1826_v18  ;;  %v1830_v24 = vadd.f32 %v1829_v22, %v1704_v15  ;;  %v1831_v25 = vpop.f32.mrb[31].mxu1 }
 0xad6   : > { %v1835_v49 = vmul.f32 %v1828_v21, %v1828_v21  ;;  %v1832_v50 = vadd.f32 %v1831_v25, %v1708_v16 }
 0xad7   : > { %v1838_v26 = vmul.f32 %v1834_v23, %v1826_v18  ;;  %v1836_v27 = vmul.f32 %v1830_v24, %v1830_v24 }
 0xad8   : > { %v1839_v30 = vmul.f32 %v1835_v49, %v1828_v21  ;;  %v1837_v31 = vmul.f32 %v1832_v50, %v1832_v50  ;;  %v2447_v49 = vld [vmem:[%s735_s30] ss:$0 sm:$0xff]  ;;  %s3271_s30 = sld [smem:[#allocation13_spill]] (!%p2449_p5) }
 0xad9   : > { %v1842_v32 = vmul.f32 0.044715, %v1838_v26  ;;  %v1840_v33 = vmul.f32 %v1836_v27, %v1830_v24  ;;  %v2448_v27 = vld [vmem:[%s738_s10] ss:$0 sm:$0xff] }
 0xada   : > { %v1843_v59 = vmul.f32 0.044715, %v1839_v30  ;;  %v1841_v34 = vmul.f32 %v1837_v31, %v1832_v50 }
 0xadb   : > { %v1846_v56 = vadd.f32 %v1842_v32, %v1826_v18  ;;  %v1844_v57 = vmul.f32 0.044715, %v1840_v33 }
 0xadc   : > { %v1847_v35 = vadd.f32 %v1843_v59, %v1828_v21  ;;  %v1845_v36 = vmul.f32 0.044715, %v1841_v34 }
 0xadd   : > { %v1850_v37 = vmul.f32 0.7978846, %v1846_v56  ;;  %v1848_v38 = vadd.f32 %v1844_v57, %v1830_v24  ;;  %v2789_v56 = vmov (!%p2449_p5), 0.0  }
 0xade   : > { %v1851_v19 = vmul.f32 0.7978846, %v1847_v35  ;;  %v1849_v39 = vadd.f32 %v1845_v36, %v1832_v50  ;;  %v2769_v34 = vld [vmem:[%s3271_s30] sm:$0xff] (!%p2449_p5)   ;;  %2617 = vmatprep.subr.bf16.mxu0 (!%p2449_p5), %v2789_v56  ;;  %v2770_v57 = vld [vmem:[%s3271_s30 + $0x8] sm:$0xff] (!%p2449_p5)   ;;  %v2771_v35 = vld [vmem:[%s3271_s30 + $0x10] sm:$0xff] (!%p2449_p5)  }
 0xadf   : > { %2757 = vtanh.f32 %v1850_v37  ;;  %v1852_v40 = vmul.f32 0.7978846, %v1848_v38  ;;  %v2772_v36 = vld [vmem:[%s3271_s30 + $0x18] sm:$0xff] (!%p2449_p5)   ;;  %v2773_v37 = vld [vmem:[%s3271_s30 + $0x20] sm:$0xff] (!%p2449_p5)   ;;  %v2774_v38 = vld [vmem:[%s3271_s30 + $0x28] sm:$0xff] (!%p2449_p5)  }
 0xae0   : > { %2759 = vtanh.f32 %v1851_v19  ;;  %v1853_v41 = vmul.f32 0.7978846, %v1849_v39  ;;  %v2775_v19 = vld [vmem:[%s3271_s30 + $0x30] sm:$0xff] (!%p2449_p5)   ;;  %v2776_v39 = vld [vmem:[%s3271_s30 + $0x38] sm:$0xff] (!%p2449_p5)  }
 0xae1   : > { %2761 = vtanh.f32 %v1852_v40 }
 0xae2   : > { %2763 = vtanh.f32 %v1853_v41  ;;  %v2450_v41 = vld [vmem:[%s3272_s23] ss:$0 sm:$0xff] (!%p2449_p5) }
 0xae9   : > { %v2758_v42 = vpop.eup %2757 }
 0xaea   : > { %v2760_v43 = vpop.eup %2759  ;;  %v1858_v44 = vadd.f32 1.0, %v2758_v42 }
 0xaeb   : > { %v2762_v45 = vpop.eup %2761  ;;  %v1859_v46 = vadd.f32 1.0, %v2760_v43 }
 0xaec   : > { %v2764_v47 = vpop.eup %2763  ;;  %v1862_v48 = vmul.f32 0.5, %v1858_v44  ;;  %v1860_v51 = vadd.f32 1.0, %v2762_v45 }
 0xaed   : > { %v1861_v28 = vadd.f32 1.0, %v2764_v47  ;;  %v1863_v52 = vmul.f32 0.5, %v1859_v46 }
 0xaee   : > { %v1864_v53 = vmul.f32 0.5, %v1860_v51  ;;  %v1866_v55 = vmul.f32 %v1862_v48, %v1826_v18 }
 0xaef   : > { %v1865_v54 = vmul.f32 0.5, %v1861_v28  ;;  %v1867_v62 = vmul.f32 %v1863_v52, %v1828_v21 }
 0xaf0   : > { %v1868_v58 = vmul.f32 %v1864_v53, %v1830_v24 }
 0xaf1   : > { %v1869_v63 = vmul.f32 %v1865_v54, %v1832_v50 }
 0xaf2   : > { %v1870_v0 = vpack.c.bf16 %v1868_v58, %v1866_v55 }
 0xaf3   : > { %v1871_v1 = vpack.c.bf16 %v1869_v63, %v1867_v62 }
 0xaf5   : > { %2039 = vmatprep.mubr.bf16.mxu0 %v1871_v1 }
 0xaf6   : > { %2040 = vmatmul.mubr.bf16.vlgmr.msra.gmra.mrb[16].mxu0 %v1870_v0 }
 0xaf7   : > { %2618 = vmatpush3.bf16.msra.mxu0 (!%p2449_p5), %v2769_v34  ;;  %2633 = vmatprep.mubr.msk.bf16.mxu0 (!%p2449_p5), %vm2790_vm5, %v2789_v56 }
 0xaf8   : > { %2619 = vmatprep.subr.bf16.mxu0 (!%p2449_p5), %v2789_v56 }
 0xafb   : > { %2620 = vmatpush3.bf16.msra.mxu0 (!%p2449_p5), %v2770_v57 }
 0xafc   : > { %2621 = vmatprep.subr.bf16.mxu0 (!%p2449_p5), %v2789_v56 }
 0xaff   : > { %2622 = vmatpush3.bf16.msra.mxu0 (!%p2449_p5), %v2771_v35 }
 0xb00   : > { %2623 = vmatprep.subr.bf16.mxu0 (!%p2449_p5), %v2789_v56 }
 0xb03   : > { %2624 = vmatpush3.bf16.msra.mxu0 (!%p2449_p5), %v2772_v36 }
 0xb04   : > { %2625 = vmatprep.subr.bf16.mxu0 (!%p2449_p5), %v2789_v56 }
 0xb07   : > { %2626 = vmatpush3.bf16.msra.mxu0 (!%p2449_p5), %v2773_v37 }
 0xb08   : > { %2627 = vmatprep.subr.bf16.mxu0 (!%p2449_p5), %v2789_v56 }
 0xb0b   : > { %2628 = vmatpush3.bf16.msra.mxu0 (!%p2449_p5), %v2774_v38 }
 0xb0c   : > { %2629 = vmatprep.subr.bf16.mxu0 (!%p2449_p5), %v2789_v56 }
 0xb0f   : > { %2630 = vmatpush3.bf16.msra.mxu0 (!%p2449_p5), %v2775_v19 }
 0xb10   : > { %2631 = vmatprep.subr.bf16.mxu0 (!%p2449_p5), %v2789_v56 }
 0xb13   : > { %2632 = vmatpush3.bf16.msra.mxu0 (!%p2449_p5), %v2776_v39 }
 0xbc9   : > { %v2514_v2 = vpop.f32.mrb[16].mxu0 }
 0xbca   : > { %v2515_v4 = vpop.f32.mrb[17].mxu0 }
 0xbcb   : > { %v2516_v5 = vadd.f32 %v2515_v4, %v2514_v2  ;;  %v2517_v6 = vpop.f32.mrb[18].mxu0 }
 0xbcc   : > { %v2518_v29 = vpop.f32.mrb[19].mxu0 }
 0xbcd   : > { %v2042_v7 = vadd.f32 %v2516_v5, %v2430_v3  ;;  %v2519_v8 = vadd.f32 %v2518_v29, %v2517_v6 }
 0xbcf   : > { %v2045_v9 = vadd.f32 %v2519_v8, %v2430_v3  ;;  %v2048_v10 = vadd.f32 %v2042_v7, %v3143_v60 }
 0xbd1   : > { %2052 = vadd.xlane.f32.xlu0 %v2048_v10  ;;  %v2049_v11 = vadd.f32 %v2045_v9, %v3145_v61 }
 0xbd3   : > { %2054 = vadd.xlane.f32.xlu1 %v2049_v11 }
 0xc5e   : > { %v2053_v12 = vpop.xlane.xlu0 %2052 }
 0xc5f   : > { %v2056_v13 = vmul.f32 0.0078125, %v2053_v12 }
 0xc60   : > { %v2055_v14 = vpop.xlane.xlu1 %2054 }
 0xc61   : > { %v2058_v15 = vsub.f32 %v2048_v10, %v2056_v13  ;;  %v2057_v16 = vmul.f32 0.0078125, %v2055_v14 }
 0xc63   : > { %v2059_v17 = vsub.f32 %v2049_v11, %v2057_v16  ;;  %v2060_v18 = vmul.f32 %v2058_v15, %v2058_v15 }
 0xc65   : > { %2062 = vadd.xlane.f32.xlu0 %v2060_v18  ;;  %v2061_v20 = vmul.f32 %v2059_v17, %v2059_v17 }
 0xc67   : > { %2064 = vadd.xlane.f32.xlu1 %v2061_v20 }
 0xcf2   : > { %v2063_v21 = vpop.xlane.xlu0 %2062 }
 0xcf3   : > { %v2066_v22 = vmul.f32 0.0078125, %v2063_v21 }
 0xcf4   : > { %v2065_v23 = vpop.xlane.xlu1 %2064 }
 0xcf5   : > { %v2068_v60 = vadd.f32 1e-12, %v2066_v22  ;;  %v2067_v24 = vmul.f32 0.0078125, %v2065_v23 }
 0xcf7   : > { %2765 = vrsqrt.f32 %v2068_v60  ;;  %v2069_v61 = vadd.f32 1e-12, %v2067_v24 }
 0xcf9   : > { %2767 = vrsqrt.f32 %v2069_v61 }
 0xd01   : > { %v2766_v25 = vpop.eup %2765 }
 0xd02   : > { %v2072_v50 = vmul.f32 %v2766_v25, %v2058_v15 }
 0xd03   : > { %v2768_v26 = vpop.eup %2767 }
 0xd04   : > { %v2080_v30 = vmul.f32 %v2447_v49, %v2072_v50  ;;  %v2073_v31 = vmul.f32 %v2768_v26, %v2059_v17  ;;  %2095 = sbr.rel (%p2449_p5) target bundleno = 3557 (0xde5), region = 100 }
 0xd06   : > { %v2088_v32 = vadd.f32 %v2448_v27, %v2080_v30  ;;  %v2081_v33 = vmul.f32 %v2447_v49, %v2073_v31 }
 0xd08   : > { %2090 = vst [vmem:[#allocation2] sm:$0xff] %v2088_v32  ;;  %v2089_v59 = vadd.f32 %v2448_v27, %v2081_v33 }
 0xd0a   : > { %2091 = vst [vmem:[#allocation2 + $0x8] sm:$0xff] %v2089_v59  ;;  %v2096_v40 = vpack.c.bf16 (!%p2449_p5), %v2089_v59, %v2088_v32 }
 0xd0c   : > { %2634 = vmatmul.mubr.bf16.vlgmr.msra.gmra.mrb[0].mxu0 %v2096_v40 }
 0xddf   : > { %v2202_v42 = vpop.f32.mrb[0].mxu0 }
 0xde0   : > { %v2203_v43 = vadd.f32 %v2450_v41, %v2202_v42  ;;  %v2635_v44 = vpop.f32.mrb[1].mxu0 }
 0xde1   : > { %v2205_v45 = vpop.f32.mrb[2].mxu0 }
 0xde2   : > { %2209 = vst [vmem:[%s3273_s22] sm:$0xff] %v2203_v43  ;;  %v2206_v46 = vadd.f32 %v2450_v41, %v2205_v45  ;;  %v2636_v47 = vpop.f32.mrb[3].mxu0 }
 0xde4   : > { %2210 = vst [vmem:[%s3273_s22 + $0x8] sm:$0xff] %v2206_v46 }
 0xde5 PF: > { %s3274_s10 = sld [smem:[#allocation4_spill]] }
 0xdeb   : > { %s28_s27 = sadd.s32 1, %s3274_s10  }
 0xdec   : > { %p25_p6 = scmp.ge.s32.totalorder %s28_s27, 4  }
 0xdee   :  { %27 = sbr.rel (!%p25_p6) target bundleno = 12 (0xc), region = 160 }

</bundles_post_ra>
